<compile_context>
chip_gen: v6e
topology: v6e:2x2x1
jax: 0.10.0
libtpu: 0.0.40
codegen_flags: <defaults>
</compile_context>

<pallas_src>
import functools

import jax
import jax.numpy as jnp
from jax import lax
from jax.experimental import pallas as pl
from jax.experimental.pallas import tpu as pltpu


def _graph_gen_kernel(x_ref, wqk_ref, o_ref, *, heads, fc_dim, bblk, n_nodes,
                      gamma_lower, gamma_upper):
    """One grid step handles `bblk` packed batch elements.

    x_ref   : (1, S+1, bblk*N)   packed inputs; last row along S+1 is ones
    wqk_ref : (2*H*F, S+1)       fused [Wq; Wk] weight with bias as last column
    o_ref   : (1, bblk, H, N*N)  lane-dense output block
    """
    hf = heads * fc_dim
    x = x_ref[0]                                               # (S+1, bblk*N)

    # Fused Q/K projection with the bias folded into the matmul:
    #   qk[i, c] = sum_s Wqk[i, s] * x[s, c]   (ones row of x supplies the bias)
    qk = jnp.dot(wqk_ref[...], x,
                 preferred_element_type=jnp.float32,
                 precision=lax.Precision.HIGHEST)              # (2HF, bblk*N)

    # Per packed batch: canonical leading-batch, transposed-LHS contraction
    #   a[h, n, m] = sum_f q[h, f, n] * k[h, f, m]
    # (MXU consumes the transposed-LHS form directly; no q transpose needed.)
    dn = (((1,), (1,)), ((0,), (0,)))
    parts = []
    for b in range(bblk):                                      # static, tiny
        cols = qk[:, b * n_nodes:(b + 1) * n_nodes]            # (2HF, N)
        q_b = cols[:hf].reshape(heads, fc_dim, n_nodes)        # (H, F, N)
        k_b = cols[hf:].reshape(heads, fc_dim, n_nodes)        # (H, F, N)
        parts.append(lax.dot_general(q_b, k_b, dn,
                                     preferred_element_type=jnp.float32,
                                     precision=lax.Precision.HIGHEST))
    a = jnp.stack(parts, axis=0)                               # (bblk, H, N, N)

    # Lane-dense (N*N = 256 lanes) before the EUP/VPU work and the store.
    a = a.reshape(bblk, heads, n_nodes * n_nodes)

    # graph_limite: sigmoid -> affine rescale -> clamp to [0, 1]
    a = jax.nn.sigmoid(a) * (gamma_upper - gamma_lower) + gamma_lower
    a = jnp.clip(a, 0.0, 1.0)

    o_ref[0] = a.astype(o_ref.dtype)


def graph_generator_forward(seq_x, wq, bq, wk, bk, *, heads, fc_dim,
                            gamma_lower, gamma_upper, grid_steps=None):
    """seq_x: (B, S, N) float32.  Returns (B, heads, N, N) float32."""
    B, S, N = seq_x.shape
    HF = heads * fc_dim
    assert wq.shape == (HF, S) and wk.shape == (HF, S)
    assert bq.shape == (HF,) and bk.shape == (HF,)

    # Grid sizing: fat steps amortize the ~0.35us/step overhead and improve
    # lane fill.  Two parallel steps keep both v7x TensorCores busy; on
    # single-TC v5e/v6e pass grid_steps=1 to collapse the loop entirely.
    if grid_steps is None:
        grid_steps = 2 if (B >= 2 and B % 2 == 0) else 1
    assert B % grid_steps == 0, (B, grid_steps)
    bblk = B // grid_steps

    # Fuse the two Linear layers (torch Linear weight is (out, in) = (HF, S))
    # and fold both biases into the matmul as an extra column (K: S -> S+1).
    wqk = jnp.concatenate([wq, wk], axis=0)                        # (2HF, S)
    bqk = jnp.concatenate([bq, bk], axis=0)[:, None]               # (2HF, 1)
    wqk_aug = jnp.concatenate([wqk, bqk], axis=1)                  # (2HF, S+1)

    # Pack bblk batches per grid step, lane-dense along the last axis:
    #   x_aug[i, s, b*N + n] = seq_x[i*bblk + b, s, n];  x_aug[i, S, :] = 1
    x_p = jnp.swapaxes(seq_x.reshape(grid_steps, bblk, S, N), 1, 2)
    x_p = x_p.reshape(grid_steps, S, bblk * N)                     # (steps, S, bblk*N)
    ones = jnp.ones((grid_steps, 1, bblk * N), seq_x.dtype)
    x_aug = jnp.concatenate([x_p, ones], axis=1)                   # (steps, S+1, bblk*N)

    kernel = functools.partial(
        _graph_gen_kernel,
        heads=heads, fc_dim=fc_dim, bblk=bblk, n_nodes=N,
        gamma_lower=float(gamma_lower), gamma_upper=float(gamma_upper))

    out = pl.pallas_call(
        kernel,
        out_shape=jax.ShapeDtypeStruct((grid_steps, bblk, heads, N * N),
                                       jnp.float32),
        grid=(grid_steps,),
        in_specs=[
            pl.BlockSpec((1, S + 1, bblk * N), lambda i: (i, 0, 0)),  # packed x
            pl.BlockSpec((2 * HF, S + 1), lambda i: (0, 0)),          # fused Wqk+b
        ],
        out_specs=pl.BlockSpec((1, bblk, heads, N * N),
                               lambda i: (i, 0, 0, 0)),
        compiler_params=pltpu.CompilerParams(
            dimension_semantics=("parallel",)),
    )(x_aug, wqk_aug)

    # Free, contiguous relabel back to (B, heads, N, N).
    return out.reshape(B, heads, N, N)


def _reference(seq_x, wq, bq, wk, bk, *, heads, fc_dim, gamma_lower, gamma_upper):
    """Pure-JAX reference mirroring the PyTorch forward pass."""
    x = jnp.transpose(seq_x, (0, 2, 1))                            # (B, N, S)
    B, N, S = x.shape
    q = jnp.dot(x, wq.T, precision=lax.Precision.HIGHEST) + bq     # (B, N, H*F)
    k = jnp.dot(x, wk.T, precision=lax.Precision.HIGHEST) + bk
    q = q.reshape(B, N, heads, fc_dim).transpose(0, 2, 1, 3)       # (B, H, N, F)
    k = k.reshape(B, N, heads, fc_dim).transpose(0, 2, 1, 3)
    a = jnp.einsum('bhnf,bhmf->bhnm', q, k,
                   precision=lax.Precision.HIGHEST)
    a = jax.nn.sigmoid(a) * (gamma_upper - gamma_lower) + gamma_lower
    a = jnp.clip(a, 0.0, 1.0)
    return a


if __name__ == "__main__":
    # configs: seq_len=8, num_nodes N=16, fc_dim_graph=32, num_corr_adj (heads)=4
    B, S, N = 2, 8, 16
    heads, fc_dim = 4, 32
    gamma_lower, gamma_upper = -0.2, 1.2   # exercise the clamp

    key = jax.random.PRNGKey(0)
    k_x, k_wq, k_bq, k_wk, k_bk = jax.random.split(key, 5)

    seq_x = jax.random.normal(k_x, (B, S, N), dtype=jnp.float32)
    HF = heads * fc_dim
    # Deterministic synthetic Linear params (torch Linear weight is (out, in)).
    wq = jax.random.normal(k_wq, (HF, S), dtype=jnp.float32) * 0.1
    bq = jax.random.normal(k_bq, (HF,), dtype=jnp.float32) * 0.1
    wk = jax.random.normal(k_wk, (HF, S), dtype=jnp.float32) * 0.1
    bk = jax.random.normal(k_bk, (HF,), dtype=jnp.float32) * 0.1

    out = graph_generator_forward(
        seq_x, wq, bq, wk, bk,
        heads=heads, fc_dim=fc_dim,
        gamma_lower=gamma_lower, gamma_upper=gamma_upper)
    out = jax.block_until_ready(out)

    ref = _reference(seq_x, wq, bq, wk, bk,
                     heads=heads, fc_dim=fc_dim,
                     gamma_lower=gamma_lower, gamma_upper=gamma_upper)

    assert out.shape == (B, heads, N, N), out.shape
    assert jnp.allclose(out, ref, atol=1e-5, rtol=1e-5), \
        float(jnp.max(jnp.abs(out - ref)))

    # Also exercise the fully-collapsed single-step path (v5e/v6e mode).
    out1 = graph_generator_forward(
        seq_x, wq, bq, wk, bk,
        heads=heads, fc_dim=fc_dim,
        gamma_lower=gamma_lower, gamma_upper=gamma_upper, grid_steps=1)
    out1 = jax.block_until_ready(out1)
    assert jnp.allclose(out1, ref, atol=1e-5, rtol=1e-5), \
        float(jnp.max(jnp.abs(out1 - ref)))

    print("KERNEL_OK")
</pallas_src>

<mosaic_0001>
module attributes {stable_mosaic.version = 11 : i64} {
  func.func @_graph_gen_kernel(%arg0: i32, %arg1: memref<1x9x16xf32, #tpu.memory_space<vmem>>, %arg2: memref<256x9xf32, #tpu.memory_space<vmem>>, %arg3: memref<1x1x4x256xf32, #tpu.memory_space<vmem>>) attributes {dimension_semantics = [#tpu.dimension_semantics<parallel>], iteration_bounds = array<i64: 2>, scalar_prefetch = 0 : i64, scratch_operands = 0 : i64, tpu.core_type = #tpu.core_type<tc>, window_params = [{transform_indices = @transform_0, window_bounds = array<i64: 1, 9, 16>}, {pipeline_mode = #tpu.pipeline_mode<synchronous>, transform_indices = @transform_1, window_bounds = array<i64: 256, 9>}, {transform_indices = @transform_2, window_bounds = array<i64: 1, 1, 4, 256>}]} {
    %c0 = arith.constant 0 : index
    %c0_0 = arith.constant 0 : index
    %c0_1 = arith.constant 0 : index
    %0 = vector.load %arg1[%c0, %c0_0, %c0_1] : memref<1x9x16xf32, #tpu.memory_space<vmem>>, vector<1x9x16xf32>
    %1 = vector.shape_cast %0 : vector<1x9x16xf32> to vector<9x16xf32>
    %c0_2 = arith.constant 0 : index
    %c0_3 = arith.constant 0 : index
    %2 = vector.load %arg2[%c0_2, %c0_3] : memref<256x9xf32, #tpu.memory_space<vmem>>, vector<256x9xf32>
    %cst = arith.constant dense<0.000000e+00> : vector<256x16xf32>
    %3 = tpu.matmul %2, %1, %cst {dimension_numbers = #tpu.dot_dimension_numbers<[1], [0], [0], [1], [0, 0, 1, 1], [], []>, precision = #tpu.contract_precision<fp32>} : vector<256x9xf32>, vector<9x16xf32>, vector<256x16xf32> -> vector<256x16xf32>
    %4 = vector.extract_strided_slice %3 {offsets = [0, 0], sizes = [128, 16], strides = [1, 1]} : vector<256x16xf32> to vector<128x16xf32>
    %5 = vector.shape_cast %4 : vector<128x16xf32> to vector<4x32x16xf32>
    %6 = vector.extract_strided_slice %3 {offsets = [128, 0], sizes = [128, 16], strides = [1, 1]} : vector<256x16xf32> to vector<128x16xf32>
    %7 = vector.shape_cast %6 : vector<128x16xf32> to vector<4x32x16xf32>
    %cst_4 = arith.constant dense<0.000000e+00> : vector<4x16x16xf32>
    %8 = tpu.matmul %5, %7, %cst_4 {dimension_numbers = #tpu.dot_dimension_numbers<[1], [1], [2], [2], [0, 0, 0, 2, 1, 2], [0], [0]>, precision = #tpu.contract_precision<fp32>} : vector<4x32x16xf32>, vector<4x32x16xf32>, vector<4x16x16xf32> -> vector<4x16x16xf32>
    %9 = vector.shape_cast %8 : vector<4x16x16xf32> to vector<1x4x16x16xf32>
    %10 = vector.shape_cast %9 : vector<1x4x16x16xf32> to vector<1x4x256xf32>
    %11 = arith.negf %10 : vector<1x4x256xf32>
    %12 = math.exp %11 : vector<1x4x256xf32>
    %cst_5 = arith.constant 1.000000e+00 : f32
    %13 = vector.broadcast %cst_5 : f32 to vector<1x4x256xf32>
    %14 = arith.addf %13, %12 : vector<1x4x256xf32>
    %15 = arith.divf %13, %14 : vector<1x4x256xf32>
    %cst_6 = arith.constant 1.400000e+00 : f32
    %16 = vector.broadcast %cst_6 : f32 to vector<1x4x256xf32>
    %17 = arith.mulf %15, %16 : vector<1x4x256xf32>
    %cst_7 = arith.constant -2.000000e-01 : f32
    %18 = vector.broadcast %cst_7 : f32 to vector<1x4x256xf32>
    %19 = arith.addf %17, %18 : vector<1x4x256xf32>
    %cst_8 = arith.constant 0.000000e+00 : f32
    %cst_9 = arith.constant 1.000000e+00 : f32
    %20 = vector.broadcast %cst_8 : f32 to vector<1x4x256xf32>
    %21 = arith.maximumf %20, %19 : vector<1x4x256xf32>
    %22 = vector.broadcast %cst_9 : f32 to vector<1x4x256xf32>
    %23 = arith.minimumf %22, %21 : vector<1x4x256xf32>
    %c0_10 = arith.constant 0 : index
    %c0_11 = arith.constant 0 : index
    %c0_12 = arith.constant 0 : index
    %c0_13 = arith.constant 0 : index
    %24 = vector.load %arg3[%c0_10, %c0_11, %c0_12, %c0_13] : memref<1x1x4x256xf32, #tpu.memory_space<vmem>>, vector<1x1x4x256xf32>
    %25 = vector.shape_cast %24 : vector<1x1x4x256xf32> to vector<1x4x256xf32>
    %26 = vector.shape_cast %23 : vector<1x4x256xf32> to vector<1x1x4x256xf32>
    tpu.vector_store %arg3[%c0_10, %c0_11, %c0_12, %c0_13], %26 {strides = array<i32>} : memref<1x1x4x256xf32, #tpu.memory_space<vmem>>, vector<1x1x4x256xf32>,
    return
  }
  func.func @transform_0(%arg0: i32) -> (i32, i32, i32) {
    %c0_i32 = arith.constant 0 : i32
    %c0_i32_0 = arith.constant 0 : i32
    %c0_i32_1 = arith.constant 0 : i32
    return %arg0, %c0_i32, %c0_i32_0 : i32, i32, i32
  }
  func.func @transform_1(%arg0: i32) -> (i32, i32) {
    %c0_i32 = arith.constant 0 : i32
    %c0_i32_0 = arith.constant 0 : i32
    %c0_i32_1 = arith.constant 0 : i32
    return %c0_i32, %c0_i32_0 : i32, i32
  }
  func.func @transform_2(%arg0: i32) -> (i32, i32, i32, i32) {
    %c0_i32 = arith.constant 0 : i32
    %c0_i32_0 = arith.constant 0 : i32
    %c0_i32_1 = arith.constant 0 : i32
    %c0_i32_2 = arith.constant 0 : i32
    return %arg0, %c0_i32, %c0_i32_0, %c0_i32_1 : i32, i32, i32, i32
  }
}

</mosaic_0001>

<bundles_post_ra>
// kernel: tpu_custom_call.1
= control target key start
LH: loop header
LB: loop body
LE: loop exit
PB: predicated region body
PF: predicated region fallthrough
CT: control target
= control target key end

     0   :  { %7 = vsyncpa [#allocation3], 0  ;;  %s7118_s0 = inlined_call_operand.vmem [shape: f32[2,9,16], index: 0, kind: input, shape index: {}]   ;;  %s7119_s1 = inlined_call_operand.vmem [shape: f32[256,9], index: 1, kind: input, shape index: {}]   ;;  %s7120_s2 = inlined_call_operand.hbm [shape: f32[2,1,4,256], index: 2, kind: output, shape index: {}]  }
   0x1   :  { %9 = vsyncpa [#allocation3 + $0x1], 0  ;;  %s5730_s9 = smov 0   ;;  %s5732_s10 = smov 0  }
   0x2   :  { %s5734_s11 = smov 0   ;;  %s5736_s12 = smov 0  }
   0x3 LB: > { %s5751_s13 = sadd.s32 4294967295, %s5702_s12   ;;  %s4645_s14 = sadd.s32 4294967294, %s5702_s12   ;;  %s5702_s12 = sphi %s5736_s12, %s7250_s12   ;;  %s5698_s11 = sphi %s5734_s11, %s7249_s11   ;;  %s5694_s10 = sphi %s5732_s10, %s7248_s10   ;;  %s5690_s9 = sphi %s5730_s9, %s7247_s9  }
   0x4   : > { %s5755_s15 = sadd.s32 1, %s5702_s12   ;;  %s69_s16 = sadd.s32 1, %s5698_s11 }
   0x5   : > { %s66_s17 = ssub.s32 %s5702_s12, %s5755_s15  ;;  %p79_p0 = scmp.ne.s32.totalorder %s5698_s11, %s5694_s10 }
   0x6   : > { %p67_p1 = scmp.eq.s32.totalorder %s66_s17, 0  ;;  %p80_p2 = scmp.eq.s32.totalorder %s5751_s13, 1 }
   0x7   : > { %p85_p3 = scmp.ne.s32.totalorder %s5694_s10, %s5690_s9  ;;  %p86_p4 = scmp.eq.s32.totalorder %s4645_s14, 1 }
   0x8   : > { %s5766_s18 = scalar_select %p67_p1, %s5698_s11, %s69_s16  }
   0x9   : > { %p5768_p5 = por %p80_p2, %p79_p0  ;;  %p5772_p6 = por %p86_p4, %p85_p3 }
   0xa   : > { %p4648_p7 = scmp.ge.s32.totalorder %s5702_s12, 1  ;;  %p115_p8 = scmp.lt.s32.totalorder %s5702_s12, 3 }
   0xc   : > { %p116_p9 = pnand %p4648_p7, %p115_p8 }
   0xe   : > { %119 = sbr.rel (%p116_p9) target bundleno = 1018 (0x3fa), region = 28 }
  0x13   : > { %p137_p10 = scmp.lt.s32.totalorder %s5751_s13, 1  ;;  %vm273_vm0 = vcmask 1040384   ;;  %v144_v0 = vld [vmem:[%s7119_s1] sm:$0xff]  ;;  %vm176_vm1 = vcmask 72704   ;;  %v145_v1 = vld [vmem:[%s7119_s1 + $0x8] sm:$0xff]  ;;  %v146_v2 = vld [vmem:[%s7119_s1 + $0x10] sm:$0xff] }
  0x14   : > { %v178_v3 = vsel %vm176_vm1, %v144_v0, 0  ;;  %v181_v4 = vsel %vm176_vm1, %v145_v1, 0  ;;  %v184_v5 = vsel %vm176_vm1, %v146_v2, 0  ;;  %v147_v6 = vld [vmem:[%s7119_s1 + $0x18] sm:$0xff]  ;;  %v148_v7 = vld [vmem:[%s7119_s1 + $0x20] sm:$0xff]  ;;  %v149_v8 = vld [vmem:[%s7119_s1 + $0x28] sm:$0xff] }
  0x15   : > { %s138_s5 = scalar_select %p137_p10, %s5751_s13, 1  ;;  %v5801_v9 = vand.u32 4294901760, %v178_v3  ;;  %v5803_v10 = vand.u32 4294901760, %v181_v4  ;;  %v5805_v11 = vand.u32 4294901760, %v184_v5  ;;  %v187_v12 = vsel %vm176_vm1, %v147_v6, 0  ;;  %v150_v13 = vld [vmem:[%s7119_s1 + $0x30] sm:$0xff] }
  0x16   : > { %v5811_v14 = vand.u32 4294901760, %v187_v12  ;;  %v190_v15 = vsel %vm176_vm1, %v148_v7, 0  ;;  %v193_v16 = vsel %vm176_vm1, %v149_v8, 0  ;;  %v196_v17 = vsel %vm176_vm1, %v150_v13, 0  ;;  %v151_v18 = vld [vmem:[%s7119_s1 + $0x38] sm:$0xff]  ;;  %v152_v45 = vld [vmem:[%s7119_s1 + $0x40] sm:$0xff] }
  0x17   : > { %7175 = vst [vmem:[#allocation5_spill] sm:$0xff] %v5803_v10  ;;  %7176 = vst [vmem:[#allocation6_spill] sm:$0xff] %v5805_v11  ;;  %s4659_s16 = sshll.u32 %s138_s5, 4  ;;  %v5820_v19 = vsub.f32 %v178_v3, %v5801_v9  ;;  %v5823_v20 = vsub.f32 %v181_v4, %v5803_v10  ;;  %v5826_v21 = vsub.f32 %v184_v5, %v5805_v11  ;;  %v5828_v22 = vand.u32 4294901760, %v190_v15  ;;  %v153_v54 = vld [vmem:[%s7119_s1 + $0x48] sm:$0xff]  ;;  %v154_v59 = vld [vmem:[%s7119_s1 + $0x50] sm:$0xff] }
  0x18   : > { %7177 = vst [vmem:[#allocation7_spill] sm:$0xff] %v5811_v14  ;;  %5065 = vmatprep.mubr.f32.mxu1 %v5801_v9  ;;  %s141_s22 = scalar_lea.vmem %s7118_s0, %s4659_s16  ;;  %v5835_v23 = vsub.f32 %v187_v12, %v5811_v14  ;;  %v5837_v24 = vand.u32 4294901760, %v193_v16  ;;  %v5839_v25 = vand.u32 4294901760, %v196_v17  ;;  %v199_v26 = vsel %vm176_vm1, %v151_v18, 0  ;;  %v155_v4 = vld [vmem:[%s7119_s1 + $0x58] sm:$0xff]  ;;  %v156_v5 = vld [vmem:[%s7119_s1 + $0x60] sm:$0xff] }
  0x19   : > { %7178 = vst [vmem:[#allocation8_spill] sm:$0xff] %v5828_v22  ;;  %v143_v27 = vld [vmem:[%s141_s22 + $0x8] sm:$0x1]  ;;  %v142_v28 = vld [vmem:[%s141_s22] sm:$0xff]  ;;  %v7135_v29 = vand.u32 4294901760, %v5820_v19  ;;  %v7134_v30 = vand.u32 4294901760, %v5823_v20  ;;  %v5846_v32 = vsub.f32 %v190_v15, %v5828_v22 }
  0x1a   : > { %7179 = vst [vmem:[#allocation9_spill] sm:$0xff] %v5837_v24  ;;  %7180 = vst [vmem:[#allocation10_spill] sm:$0xff] %v5839_v25  ;;  %v7133_v31 = vand.u32 4294901760, %v5826_v21  ;;  %v275_v33 = vsel %vm273_vm0, %v143_v27, 0  ;;  %v5849_v34 = vand.u32 4294901760, %v142_v28  ;;  %v7132_v35 = vand.u32 4294901760, %v5835_v23 }
  0x1b   : > { %v5853_v36 = vsub.f32 %v193_v16, %v5837_v24  ;;  %v5855_v37 = vand.u32 4294901760, %v275_v33  ;;  %v347_v38 = vsub.f32 %v5820_v19, %v7135_v29  ;;  %v357_v39 = vsub.f32 %v5823_v20, %v7134_v30  ;;  %v157_v18 = vld [vmem:[%s7119_s1 + $0x68] sm:$0xff]  ;;  %s5706_s5 = smov 64   ;;  %s5707_s6 = smov 32  }
  0x1c   : > { %v367_v40 = vsub.f32 %v5826_v21, %v7133_v31  ;;  %v377_v41 = vsub.f32 %v5835_v23, %v7132_v35  ;;  %v701_v42 = vsub.f32 %v142_v28, %v5849_v34  ;;  %v7131_v43 = vand.u32 4294901760, %v5846_v32  ;;  %s5709_s7 = smov 48   ;;  %s5710_s8 = smov 16  }
  0x1d   : > { %v7129_v44 = vand.u32 4294901760, %v5853_v36  ;;  %5009 = vmatprep.subr.mxu0 %v5855_v37  ;;  %v348_v46 = vand.u32 4294901760, %v347_v38  ;;  %v358_v47 = vand.u32 4294901760, %v357_v39  ;;  %v694_v49 = vsub.f32 %v275_v33, %v5855_v37  ;;  %s5711_s14 = smov 80   ;;  %s5712_s16 = smov 96  }
  0x1e   : > { %v368_v48 = vand.u32 4294901760, %v367_v40  ;;  %5010 = vmatpush3.msra.mxu0 %v5855_v37  ;;  %v378_v50 = vand.u32 4294901760, %v377_v41  ;;  %v5878_v51 = vand.u32 4294901760, %v701_v42  ;;  %v387_v52 = vsub.f32 %v5846_v32, %v7131_v43  ;;  %v168_v43 = vld [vmem:[%s7119_s1 + $0xc0] sm:$0xff]  ;;  %s5713_s17 = smov 112   ;;  %s134_s21 = sand.u32 1, %s5694_s10  }
  0x1f   : > { %v5886_v53 = vsub.f32 %v5853_v36, %v7129_v44  ;;  %5011 = vmatprep.subr.mxu0 %v5849_v34  ;;  %5013 = vmatprep.mubr.f32.mxu0 %v348_v46  ;;  %v5892_v55 = vand.u32 4294901760, %v694_v49  ;;  %v5895_v56 = vsub.f32 %v196_v17, %v5839_v25  ;;  %v5897_v57 = vand.u32 4294901760, %v199_v26  ;;  %s4649_s22 = sshll.u32 %s134_s21, 3  ;;  %s4660_s23 = sshll.u32 %s5751_s13, 7 }
  0x20   : > { %v202_v58 = vsel %vm176_vm1, %v152_v45, 0  ;;  %5012 = vmatpush3.msra.mxu0 %v5849_v34  ;;  %v703_v60 = vsub.f32 %v701_v42, %v5878_v51  ;;  %v388_v61 = vand.u32 4294901760, %v387_v52  ;;  %v205_v3 = vsel %vm176_vm1, %v153_v54, 0  ;;  %v158_v45 = vld [vmem:[%s7119_s1 + $0x70] sm:$0xff]  ;;  %v160_v54 = vld [vmem:[%s7119_s1 + $0x80] sm:$0xff]  ;;  %s136_s24 = scalar_lea.vmem [#allocation2], %s4649_s22  ;;  %s4584_s28 = scalar_lea.hbm %s7120_s2, %s4660_s23 }
  0x21   : > { %7181 = vst [vmem:[#allocation11_spill] sm:$0xff] %v5897_v57  ;;  %v398_v62 = vand.u32 4294901760, %v5886_v53  ;;  %v5906_v63 = vand.u32 4294901760, %v202_v58  ;;  %5014 = vmatmul.mubr.f32.vlgmr.msra.gmra.mxu0 %v358_v47  ;;  %v696_v0 = vsub.f32 %v694_v49, %v5892_v55  ;;  %5113 = vmatprep.subr.mxu0 %v694_v49  ;;  %v7128_v1 = vand.u32 4294901760, %v5895_v56  ;;  %v159_v53 = vld [vmem:[%s7119_s1 + $0x78] sm:$0xff]  ;;  %s4586_s25 = sshll.u32 %s136_s24, 4  ;;  %s4587_s25 = int_to_ptr.vmem [resolvable:$true] %s4586_s25 }
  0x22   : > { %v5911_v2 = vsub.f32 %v199_v26, %v5897_v57  ;;  %5016 = vmatprep.mubr.f32.mxu0 %v368_v48  ;;  %v704_v6 = vand.u32 4294901760, %v703_v60  ;;  %5114 = vmatpush3.msra.mxu0 %v694_v49  ;;  %v5923_v8 = vand.u32 4294901760, %v205_v3  ;;  %v208_v12 = vsel %vm176_vm1, %v154_v59, 0  ;;  %s4572_s29 = scalar_lea.sflag [#allocation3], %s134_s21  ;;  %s5642_s30 = scalar_lea.vmem %s4587_s25, 128 }
  0x23   : > { %7182 = vst [vmem:[#allocation12_spill] sm:$0xff] %v5906_v63  ;;  %v5921_v7 = vsub.f32 %v202_v58, %v5906_v63  ;;  %v697_v13 = vand.u32 4294901760, %v696_v0  ;;  %v407_v15 = vsub.f32 %v5895_v56, %v7128_v1  ;;  %v5930_v17 = vand.u32 4294901760, %v208_v12  ;;  %5115 = vmatprep.subr.mxu0 %v701_v42  ;;  %p5643_p11 = scmp.ne.s32.totalorder %s4587_s25, %s5642_s30  ;;  %s5714_s3 = smov [#allocation2]  }
  0x24   : > { %7183 = vst [vmem:[#allocation13_spill] sm:$0xff] %v5923_v8  ;;  %v7125_v16 = vand.u32 4294901760, %v5911_v2  ;;  %v5937_v27 = vsub.f32 %v205_v3, %v5923_v8  ;;  %v211_v28 = vsel %vm176_vm1, %v155_v4, 0  ;;  %v214_v33 = vsel %vm176_vm1, %v156_v5, 0  ;;  %5116 = vmatpush3.msra.mxu0 %v701_v42  ;;  %s5646_s4 = sshll.u32 %s5714_s3, 4  ;;  %s5647_s4 = int_to_ptr.vmem [resolvable:$false] %s5646_s4 }
  0x25   : > { %7184 = vst [vmem:[#allocation14_spill] sm:$0xff] %v5930_v17  ;;  %v7124_v26 = vand.u32 4294901760, %v5921_v7  ;;  %5017 = vmatmul.mubr.f32.gmra.mxu0 %v378_v50  ;;  %5061 = vmatprep.subr.mxu1 %v697_v13  ;;  %v408_v38 = vand.u32 4294901760, %v407_v15  ;;  %v5945_v40 = vsub.f32 %v208_v12, %v5930_v17  ;;  %v5947_v41 = vand.u32 4294901760, %v211_v28  ;;  %p5644_p12 = pnand %p5643_p11, %p5768_p5  ;;  %s5648_s13 = scalar_lea.vmem %s5647_s4, 256 }
  0x26   : > { %v417_v39 = vsub.f32 %v5911_v2, %v7125_v16  ;;  %5062 = vmatpush3.msra.mxu1 %v697_v13  ;;  %5019 = vmatprep.mubr.f32.mxu0 %v388_v61  ;;  %v7123_v46 = vand.u32 4294901760, %v5937_v27  ;;  %v5956_v47 = vand.u32 4294901760, %v214_v33  ;;  %v217_v48 = vsel %vm176_vm1, %v157_v18, 0  ;;  %v165_v16 = vld [vmem:[%s7119_s1 + $0xa8] sm:$0xff]  ;;  %p5649_p0 = scmp.lt.s32.totalorder %s4587_s25, %s5647_s4  ;;  %p5650_p1 = scmp.lt.s32.totalorder %s5648_s13, %s5642_s30 }
  0x27   : > { %7185 = vst [vmem:[#allocation15_spill] sm:$0xff] %v5947_v41  ;;  %v427_v42 = vsub.f32 %v5921_v7, %v7124_v26  ;;  %5063 = vmatprep.subr.mxu1 %v704_v6  ;;  %v7122_v49 = vand.u32 4294901760, %v5945_v40  ;;  %v5961_v50 = vsub.f32 %v211_v28, %v5947_v41  ;;  %v5963_v52 = vand.u32 4294901760, %v217_v48  ;;  %5217 = vmatprep.subr.mxu0 %v5892_v55  ;;  %p5645_p13 = pneg %p5644_p12 }
  0x28   : > { %7186 = vst [vmem:[#allocation16_spill] sm:$0xff] %v5956_v47  ;;  %5064 = vmatpush3.msra.mxu1 %v704_v6  ;;  %v418_v58 = vand.u32 4294901760, %v417_v39  ;;  %v437_v59 = vsub.f32 %v5937_v27, %v7123_v46  ;;  %v5976_v60 = vsub.f32 %v214_v33, %v5956_v47  ;;  %v220_v61 = vsel %vm176_vm1, %v158_v45, 0  ;;  %v161_v6 = vld [vmem:[%s7119_s1 + $0x88] sm:$0xff]  ;;  %p5651_p2 = por %p5650_p1, %p5649_p0 }
  0x29   : > { %7187 = vst [vmem:[#allocation17_spill] sm:$0xff] %v5963_v52  ;;  %5020 = vmatmul.mubr.f32.gmra.mxu0 %v398_v62  ;;  %5066 = vmatmul.mubr.f32.vlgmr.msra.gmra.mxu1 %v5803_v10  ;;  %v447_v0 = vsub.f32 %v5945_v40, %v7122_v49  ;;  %v7121_v3 = vand.u32 4294901760, %v5961_v50  ;;  %v5985_v4 = vsub.f32 %v217_v48, %v5963_v52  ;;  %v5987_v5 = vand.u32 4294901760, %v220_v61  ;;  %v164_v49 = vld [vmem:[%s7119_s1 + $0xa0] sm:$0xff] }
  0x2a   : > { %5165 = vmatprep.subr.mxu1 %v5855_v37  ;;  %5022 = vmatprep.mubr.f32.mxu0 %v408_v38  ;;  %v428_v62 = vand.u32 4294901760, %v427_v42  ;;  %v7127_v12 = vand.u32 4294901760, %v5976_v60  ;;  %v223_v13 = vsel %vm176_vm1, %v159_v53, 0  ;;  %v226_v15 = vsel %vm176_vm1, %v160_v54, 0  ;;  %v162_v38 = vld [vmem:[%s7119_s1 + $0x90] sm:$0xff]  ;;  %p5652_p3 = pnand %p5651_p2, %p5645_p13 }
  0x2b   : > { %7188 = vst [vmem:[#allocation18_spill] sm:$0xff] %v5987_v5  ;;  %5166 = vmatpush3.msra.mxu1 %v5855_v37  ;;  %5068 = vmatprep.mubr.f32.mxu1 %v5805_v11  ;;  %v457_v18 = vsub.f32 %v5961_v50, %v7121_v3  ;;  %v7126_v28 = vand.u32 4294901760, %v5985_v4  ;;  %v6003_v33 = vsub.f32 %v220_v61, %v5987_v5  ;;  %v6008_v39 = vand.u32 4294901760, %v223_v13  ;;  %v163_v3 = vld [vmem:[%s7119_s1 + $0x98] sm:$0xff] }
  0x2c   : > { %v6010_v45 = vand.u32 4294901760, %v226_v15  ;;  %v229_v42 = vsel %vm176_vm1, %v161_v6, 0  ;;  %5167 = vmatprep.subr.mxu1 %v5849_v34  ;;  %v438_v48 = vand.u32 4294901760, %v437_v59  ;;  %v448_v53 = vand.u32 4294901760, %v447_v0 }
  0x2d   : > { %5023 = vmatmul.mubr.f32.gmra.mxu0 %v418_v58  ;;  %5069 = vmatmul.mubr.f32.gmra.mxu1 %v5811_v14  ;;  %v7130_v54 = vand.u32 4294901760, %v6003_v33  ;;  %v6016_v61 = vand.u32 4294901760, %v229_v42  ;;  %v467_v58 = vsub.f32 %v5976_v60, %v7127_v12  ;;  %v6029_v59 = vsub.f32 %v223_v13, %v6008_v39 }
  0x2e   : > { %7189 = vst [vmem:[#allocation19_spill] sm:$0xff] %v6010_v45  ;;  %5025 = vmatprep.mubr.f32.mxu0 %v428_v62  ;;  %5071 = vmatprep.mubr.f32.mxu1 %v5828_v22  ;;  %v6032_v0 = vsub.f32 %v226_v15, %v6010_v45  ;;  %v232_v6 = vsel %vm176_vm1, %v162_v38, 0  ;;  %v458_v46 = vand.u32 4294901760, %v457_v18  ;;  %v477_v26 = vsub.f32 %v5985_v4, %v7126_v28 }
  0x2f   : > { %7190 = vst [vmem:[#allocation20_spill] sm:$0xff] %v6016_v61  ;;  %v6038_v62 = vand.u32 4294901760, %v232_v6  ;;  %5168 = vmatpush3.msra.mxu1 %v5849_v34  ;;  %v7136_v13 = vand.u32 4294901760, %v6029_v59  ;;  %v6046_v15 = vsub.f32 %v229_v42, %v6016_v61  ;;  %v235_v38 = vsel %vm176_vm1, %v163_v3, 0 }
  0x30   : > { %v238_v18 = vsel %vm176_vm1, %v164_v49, 0  ;;  %5269 = vmatprep.subr.mxu1 %v5855_v37  ;;  %v487_v28 = vsub.f32 %v6003_v33, %v7130_v54  ;;  %v7137_v12 = vand.u32 4294901760, %v6032_v0  ;;  %v6059_v42 = vand.u32 4294901760, %v235_v38  ;;  %v166_v49 = vld [vmem:[%s7119_s1 + $0xb0] sm:$0xff] }
  0x31   : > { %5026 = vmatmul.mubr.f32.gmra.mxu0 %v438_v48  ;;  %5072 = vmatmul.mubr.f32.gmra.mxu1 %v5837_v24  ;;  %v6057_v1 = vsub.f32 %v232_v6, %v6038_v62  ;;  %v468_v3 = vand.u32 4294901760, %v467_v58  ;;  %v6065_v48 = vand.u32 4294901760, %v238_v18  ;;  %v241_v44 = vsel %vm176_vm1, %v165_v16, 0  ;;  %v167_v6 = vld [vmem:[%s7119_s1 + $0xb8] sm:$0xff] }
  0x32   : > { %5028 = vmatprep.mubr.f32.mxu0 %v448_v53  ;;  %5074 = vmatprep.mubr.f32.mxu1 %v5839_v25  ;;  %v478_v54 = vand.u32 4294901760, %v477_v26  ;;  %v497_v53 = vsub.f32 %v6029_v59, %v7136_v13  ;;  %v7140_v35 = vand.u32 4294901760, %v6046_v15  ;;  %v6078_v58 = vand.u32 4294901760, %v241_v44 }
  0x33   : > { %v244_v31 = vsel %vm176_vm1, %v166_v49, 0  ;;  %v488_v16 = vand.u32 4294901760, %v487_v28  ;;  %v507_v26 = vsub.f32 %v6032_v0, %v7137_v12  ;;  %v6087_v29 = vsub.f32 %v235_v38, %v6059_v42  ;;  %v169_v12 = vld [vmem:[%s7119_s1 + $0xc8] sm:$0xff] }
  0x34   : > { %v6091_v13 = vsub.f32 %v238_v18, %v6065_v48  ;;  %v6093_v49 = vand.u32 4294901760, %v244_v31  ;;  %v250_v28 = vsel %vm176_vm1, %v168_v43, 0  ;;  %v498_v30 = vand.u32 4294901760, %v497_v53 }
  0x35   : > { %5029 = vmatmul.mubr.f32.gmra.mxu0 %v458_v46  ;;  %5075 = vmatmul.mubr.f32.gmra.mxu1 %v5897_v57  ;;  %v247_v46 = vsel %vm176_vm1, %v167_v6, 0  ;;  %v517_v38 = vsub.f32 %v6046_v15, %v7140_v35  ;;  %v170_v6 = vld [vmem:[%s7119_s1 + $0xd0] sm:$0xff]  ;;  %v253_v35 = vsel %vm176_vm1, %v169_v12, 0  ;;  %v7191_v57 = vand.u32 4294901760, %v6057_v1 }
  0x36   : > { %5031 = vmatprep.mubr.f32.mxu0 %v468_v3  ;;  %5077 = vmatprep.mubr.f32.mxu1 %v5906_v63  ;;  %v6104_v3 = vsub.f32 %v241_v44, %v6078_v58  ;;  %v6106_v18 = vand.u32 4294901760, %v247_v46  ;;  %v6114_v53 = vsub.f32 %v244_v31, %v6093_v49  ;;  %v6116_v63 = vand.u32 4294901760, %v250_v28  ;;  %v171_v31 = vld [vmem:[%s7119_s1 + $0xd8] sm:$0xff] }
  0x37   : > { %v508_v44 = vand.u32 4294901760, %v507_v26  ;;  %v527_v25 = vsub.f32 %v6057_v1, %v7191_v57  ;;  %v172_v26 = vld [vmem:[%s7119_s1 + $0xe0] sm:$0xff]  ;;  %v518_v57 = vand.u32 4294901760, %v517_v38  ;;  %v7193_v24 = vand.u32 4294901760, %v6091_v13 }
  0x38   : > { %v6130_v12 = vsub.f32 %v247_v46, %v6106_v18  ;;  %v6143_v43 = vsub.f32 %v250_v28, %v6116_v63  ;;  %v259_v38 = vsel %vm176_vm1, %v171_v31, 0  ;;  %v7194_v28 = vand.u32 4294901760, %v6104_v3 }
  0x39   : > { %5032 = vmatmul.mubr.f32.gmra.mxu0 %v478_v54  ;;  %5078 = vmatmul.mubr.f32.gmra.mxu1 %v5923_v8  ;;  %v256_v8 = vsel %vm176_vm1, %v170_v6, 0  ;;  %v7192_v6 = vand.u32 4294901760, %v6087_v29  ;;  %v528_v46 = vand.u32 4294901760, %v527_v25  ;;  %vm2101_vm2 = vcmask 261120  }
  0x3a   : > { %5034 = vmatprep.mubr.f32.mxu0 %v488_v16  ;;  %5080 = vmatprep.mubr.f32.mxu1 %v5930_v17  ;;  %v6132_v16 = vand.u32 4294901760, %v253_v35  ;;  %v6149_v22 = vand.u32 4294901760, %v256_v8  ;;  %vm4526_vm3 = vcmask 130048   ;;  %vm4529_vm4 = vcmask 392192  }
  0x3b   : > { %v537_v54 = vsub.f32 %v6087_v29, %v7192_v6  ;;  %v173_v6 = vld [vmem:[%s7119_s1 + $0xe8] sm:$0xff]  ;;  %vm4531_vm5 = vcmask 523264   ;;  %vm4533_vm6 = vcmask 654336   ;;  %vm4535_vm7 = vcmask 785408  }
  0x3c   : > { %v6161_v17 = vsub.f32 %v253_v35, %v6132_v16  ;;  %v6175_v25 = vsub.f32 %v256_v8, %v6149_v22  ;;  %vm4537_vm8 = vcmask 916480  }
  0x3d   : > { %5035 = vmatmul.mubr.f32.gmra.mxu0 %v498_v30  ;;  %5081 = vmatmul.mubr.f32.gmra.mxu1 %v5947_v41  ;;  %v547_v30 = vsub.f32 %v6091_v13, %v7193_v24  ;;  %v262_v41 = vsel %vm176_vm1, %v172_v26, 0  ;;  %v174_v24 = vld [vmem:[%s7119_s1 + $0xf0] sm:$0xff]  ;;  %v538_v31 = vand.u32 4294901760, %v537_v54  ;;  %v7195_v26 = vand.u32 4294901760, %v6114_v53 }
  0x3e   : > { %5037 = vmatprep.mubr.f32.mxu0 %v508_v44  ;;  %5083 = vmatprep.mubr.f32.mxu1 %v5956_v47  ;;  %v557_v44 = vsub.f32 %v6104_v3, %v7194_v28  ;;  %v6171_v28 = vand.u32 4294901760, %v259_v38  ;;  %v6177_v11 = vand.u32 4294901760, %v262_v41  ;;  %v268_v54 = vsel %vm176_vm1, %v174_v24, 0 }
  0x3f   : > { %v567_v47 = vsub.f32 %v6114_v53, %v7195_v26  ;;  %v548_v35 = vand.u32 4294901760, %v547_v30  ;;  %v175_v26 = vld [vmem:[%s7119_s1 + $0xf8] sm:$0xff] }
  0x40   : > { %v558_v14 = vand.u32 4294901760, %v557_v44  ;;  %v6193_v24 = vsub.f32 %v259_v38, %v6171_v28  ;;  %v6200_v44 = vsub.f32 %v262_v41, %v6177_v11 }
  0x41   : > { %5038 = vmatmul.mubr.f32.gmra.mxu0 %v518_v57  ;;  %5084 = vmatmul.mubr.f32.gmra.mxu1 %v5963_v52  ;;  %v265_v57 = vsel %vm176_vm1, %v173_v6, 0  ;;  %v7196_v52 = vand.u32 4294901760, %v6130_v12  ;;  %v568_v8 = vand.u32 4294901760, %v567_v47  ;;  %v271_v47 = vsel %vm176_vm1, %v175_v26, 0 }
  0x42   : > { %5040 = vmatprep.mubr.f32.mxu0 %v528_v46  ;;  %5086 = vmatprep.mubr.f32.mxu1 %v5987_v5  ;;  %v7197_v5 = vand.u32 4294901760, %v6143_v43  ;;  %v6195_v10 = vand.u32 4294901760, %v265_v57  ;;  %v7199_v26 = vand.u32 4294901760, %v6175_v25 }
  0x43   : > { %v577_v46 = vsub.f32 %v6130_v12, %v7196_v52  ;;  %v6213_v52 = vand.u32 4294901760, %v271_v47 }
  0x44   : > { %v587_v6 = vsub.f32 %v6143_v43, %v7197_v5  ;;  %v7198_v5 = vand.u32 4294901760, %v6161_v17 }
  0x45   : > { %5041 = vmatmul.mubr.f32.gmra.mxu0 %v538_v31  ;;  %5087 = vmatmul.mubr.f32.gmra.mxu1 %v6008_v39  ;;  %v6202_v31 = vand.u32 4294901760, %v268_v54  ;;  %v578_v30 = vand.u32 4294901760, %v577_v46  ;;  %v626_v46 = vand.u32 4294901760, %v6200_v44 }
  0x46   : > { %5043 = vmatprep.mubr.f32.mxu0 %v548_v35  ;;  %5089 = vmatprep.mubr.f32.mxu1 %v6010_v45  ;;  %v597_v38 = vsub.f32 %v6161_v17, %v7198_v5  ;;  %v7171_v35 = vand.u32 4294901760, %v6193_v24  ;;  %v6211_v45 = vsub.f32 %v265_v57, %v6195_v10  ;;  %v588_v41 = vand.u32 4294901760, %v587_v6 }
  0x47   : > { %v6229_v6 = vsub.f32 %v271_v47, %v6213_v52 }
  0x48   : > { %v598_v57 = vand.u32 4294901760, %v597_v38  ;;  %v7172_v5 = vand.u32 4294901760, %v6211_v45 }
  0x49   : > { %5044 = vmatmul.mubr.f32.gmra.mxu0 %v558_v14  ;;  %5090 = vmatmul.mubr.f32.gmra.mxu1 %v6016_v61  ;;  %v607_v14 = vsub.f32 %v6175_v25, %v7199_v26  ;;  %v6221_v61 = vsub.f32 %v268_v54, %v6202_v31  ;;  %v627_v54 = vsub.f32 %v6200_v44, %v626_v46  ;;  %v656_v47 = vand.u32 4294901760, %v6229_v6 }
  0x4a   : > { %5046 = vmatprep.mubr.f32.mxu0 %v568_v8  ;;  %5092 = vmatprep.mubr.f32.mxu1 %v6038_v62  ;;  %v617_v8 = vsub.f32 %v6193_v24, %v7171_v35  ;;  %v637_v35 = vsub.f32 %v6211_v45, %v7172_v5 }
  0x4b   : > { %v608_v26 = vand.u32 4294901760, %v607_v14 }
  0x4c   : > { %v618_v38 = vand.u32 4294901760, %v617_v8  ;;  %v657_v8 = vsub.f32 %v6229_v6, %v656_v47 }
  0x4d   : > { %5047 = vmatmul.mubr.f32.gmra.mxu0 %v578_v30  ;;  %5093 = vmatmul.mubr.f32.gmra.mxu1 %v6059_v42  ;;  %v646_v30 = vand.u32 4294901760, %v6221_v61 }
  0x4e   : > { %5049 = vmatprep.mubr.f32.mxu0 %v588_v41  ;;  %5095 = vmatprep.mubr.f32.mxu1 %v6065_v48  ;;  %v628_v41 = vand.u32 4294901760, %v627_v54  ;;  %v7240_v54 = vld [vmem:[#allocation16_spill] sm:$0xff] }
  0x4f   : > { %v647_v14 = vsub.f32 %v6221_v61, %v646_v30 }
  0x51   : > { %5050 = vmatmul.mubr.f32.gmra.mxu0 %v598_v57  ;;  %5096 = vmatmul.mubr.f32.gmra.mxu1 %v6078_v58  ;;  %v638_v57 = vand.u32 4294901760, %v637_v35  ;;  %v648_v5 = vand.u32 4294901760, %v647_v14  ;;  %v7200_v35 = vand.u32 4294901760, %v5820_v19 }
  0x52   : > { %5052 = vmatprep.mubr.f32.mxu0 %v608_v26  ;;  %5098 = vmatprep.mubr.f32.mxu1 %v6093_v49  ;;  %v658_v26 = vand.u32 4294901760, %v657_v8 }
  0x55   : > { %5053 = vmatmul.mubr.f32.gmra.mxu0 %v618_v38  ;;  %5099 = vmatmul.mubr.f32.gmra.mxu1 %v6106_v18  ;;  %v7242_v38 = vld [vmem:[#allocation18_spill] sm:$0xff] }
  0x56   : > { %5055 = vmatprep.mubr.f32.mxu0 %v628_v41  ;;  %5101 = vmatprep.mubr.f32.mxu1 %v6116_v63  ;;  %v7244_v41 = vld [vmem:[#allocation20_spill] sm:$0xff] }
  0x59   : > { %5056 = vmatmul.mubr.f32.gmra.mxu0 %v638_v57  ;;  %5102 = vmatmul.mubr.f32.gmra.mxu1 %v6132_v16 }
  0x5a   : > { %5058 = vmatprep.mubr.f32.mxu0 %v648_v5  ;;  %5104 = vmatprep.mubr.f32.mxu1 %v6149_v22  ;;  %v7201_v5 = vand.u32 4294901760, %v5823_v20 }
  0x5d   : > { %5059 = vmatmul.mubr.f32.gmra.mxu0 %v658_v26  ;;  %5105 = vmatmul.mubr.f32.gmra.mxu1 %v6171_v28 }
  0x5e   : > { %5107 = vmatprep.mubr.f32.mxu1 %v6177_v11  ;;  %5117 = vmatprep.mubr.f32.mxu0 %v5820_v19  ;;  %v7203_v19 = vand.u32 4294901760, %v5835_v23 }
  0x61   : > { %5108 = vmatmul.mubr.f32.gmra.mxu1 %v6195_v10  ;;  %5118 = vmatmul.mubr.f32.vlgmr.msra.gmra.mxu0 %v5823_v20  ;;  %v7204_v20 = vand.u32 4294901760, %v5846_v32 }
  0x62   : > { %5110 = vmatprep.mubr.f32.mxu1 %v6202_v31  ;;  %5120 = vmatprep.mubr.f32.mxu0 %v5826_v21 }
  0x63   : > { %5218 = vmatpush3.msra.mxu0 %v5892_v55  ;;  %v7202_v55 = vand.u32 4294901760, %v5826_v21  ;;  %v7206_v21 = vand.u32 4294901760, %v5895_v56 }
  0x64   : > { %5219 = vmatprep.subr.mxu0 %v5878_v51 }
  0x65   : > { %5111 = vmatmul.mubr.f32.gmra.mxu1 %v6213_v52  ;;  %5121 = vmatmul.mubr.f32.gmra.mxu0 %v5835_v23  ;;  %v7207_v23 = vand.u32 4294901760, %v5911_v2 }
  0x66   : > { %5123 = vmatprep.mubr.f32.mxu0 %v5846_v32  ;;  %5169 = vmatprep.mubr.f32.mxu1 %v7200_v35  ;;  %v7208_v32 = vand.u32 4294901760, %v5921_v7 }
  0x67   : > { %5220 = vmatpush3.msra.mxu0 %v5878_v51  ;;  %v7211_v51 = vand.u32 4294901760, %v5961_v50 }
  0x69   : > { %5124 = vmatmul.mubr.f32.gmra.mxu0 %v5853_v36  ;;  %5170 = vmatmul.mubr.f32.vlgmr.msra.gmra.mxu1 %v7201_v5 }
  0x6a   : > { %5270 = vmatpush3.msra.mxu1 %v5855_v37  ;;  %5126 = vmatprep.mubr.f32.mxu0 %v5895_v56  ;;  %v7205_v37 = vand.u32 4294901760, %v5853_v36  ;;  %v7210_v36 = vand.u32 4294901760, %v5945_v40  ;;  %v7212_v56 = vand.u32 4294901760, %v5976_v60 }
  0x6b   : > { %5172 = vmatprep.mubr.f32.mxu1 %v7202_v55  ;;  %5271 = vmatprep.subr.mxu1 %v5849_v34 }
  0x6c   : > { %5272 = vmatpush3.msra.mxu1 %v5849_v34  ;;  %v7209_v34 = vand.u32 4294901760, %v5937_v27 }
  0x6d   : > { %5127 = vmatmul.mubr.f32.gmra.mxu0 %v5911_v2  ;;  %5173 = vmatmul.mubr.f32.gmra.mxu1 %v7203_v19  ;;  %v7213_v2 = vand.u32 4294901760, %v5985_v4 }
  0x6e   : > { %5129 = vmatprep.mubr.f32.mxu0 %v5921_v7  ;;  %5175 = vmatprep.mubr.f32.mxu1 %v7204_v20  ;;  %v7214_v7 = vand.u32 4294901760, %v6003_v33 }
  0x71   : > { %5130 = vmatmul.mubr.f32.gmra.mxu0 %v5937_v27  ;;  %5176 = vmatmul.mubr.f32.gmra.mxu1 %v7205_v37  ;;  %v7215_v27 = vand.u32 4294901760, %v6029_v59 }
  0x72   : > { %5132 = vmatprep.mubr.f32.mxu0 %v5945_v40  ;;  %5178 = vmatprep.mubr.f32.mxu1 %v7206_v21  ;;  %v7216_v40 = vand.u32 4294901760, %v6032_v0 }
  0x75   : > { %5133 = vmatmul.mubr.f32.gmra.mxu0 %v5961_v50  ;;  %5179 = vmatmul.mubr.f32.gmra.mxu1 %v7207_v23  ;;  %v7217_v50 = vand.u32 4294901760, %v6046_v15 }
  0x76   : > { %5135 = vmatprep.mubr.f32.mxu0 %v5976_v60  ;;  %5181 = vmatprep.mubr.f32.mxu1 %v7208_v32  ;;  %v7218_v60 = vand.u32 4294901760, %v6057_v1 }
  0x79   : > { %5136 = vmatmul.mubr.f32.gmra.mxu0 %v5985_v4  ;;  %5182 = vmatmul.mubr.f32.gmra.mxu1 %v7209_v34  ;;  %v7219_v4 = vand.u32 4294901760, %v6087_v29 }
  0x7a   : > { %5138 = vmatprep.mubr.f32.mxu0 %v6003_v33  ;;  %5184 = vmatprep.mubr.f32.mxu1 %v7210_v36  ;;  %v7220_v33 = vand.u32 4294901760, %v6091_v13 }
  0x7d   : > { %5139 = vmatmul.mubr.f32.gmra.mxu0 %v6029_v59  ;;  %5185 = vmatmul.mubr.f32.gmra.mxu1 %v7211_v51  ;;  %v7221_v59 = vand.u32 4294901760, %v6104_v3 }
  0x7e   : > { %5141 = vmatprep.mubr.f32.mxu0 %v6032_v0  ;;  %5187 = vmatprep.mubr.f32.mxu1 %v7212_v56  ;;  %v7224_v0 = vand.u32 4294901760, %v6143_v43 }
  0x81   : > { %5142 = vmatmul.mubr.f32.gmra.mxu0 %v6046_v15  ;;  %5188 = vmatmul.mubr.f32.gmra.mxu1 %v7213_v2  ;;  %v7226_v15 = vand.u32 4294901760, %v6175_v25 }
  0x82   : > { %5144 = vmatprep.mubr.f32.mxu0 %v6057_v1  ;;  %5190 = vmatprep.mubr.f32.mxu1 %v7214_v7  ;;  %v7222_v1 = vand.u32 4294901760, %v6114_v53 }
  0x85   : > { %5145 = vmatmul.mubr.f32.gmra.mxu0 %v6087_v29  ;;  %5191 = vmatmul.mubr.f32.gmra.mxu1 %v7215_v27  ;;  %v7223_v29 = vand.u32 4294901760, %v6130_v12 }
  0x86   : > { %5147 = vmatprep.mubr.f32.mxu0 %v6091_v13  ;;  %5193 = vmatprep.mubr.f32.mxu1 %v7216_v40  ;;  %v7225_v13 = vand.u32 4294901760, %v6161_v17 }
  0x89   : > { %5148 = vmatmul.mubr.f32.gmra.mxu0 %v6104_v3  ;;  %5194 = vmatmul.mubr.f32.gmra.mxu1 %v7217_v50  ;;  %v7227_v3 = vand.u32 4294901760, %v6193_v24 }
  0x8a   : > { %5150 = vmatprep.mubr.f32.mxu0 %v6114_v53  ;;  %5196 = vmatprep.mubr.f32.mxu1 %v7218_v60  ;;  %v7230_v53 = vld [vmem:[#allocation6_spill] sm:$0xff] }
  0x8d   : > { %5151 = vmatmul.mubr.f32.gmra.mxu0 %v6130_v12  ;;  %5197 = vmatmul.mubr.f32.gmra.mxu1 %v7219_v4  ;;  %v7231_v12 = vld [vmem:[#allocation7_spill] sm:$0xff] }
  0x8e   : > { %5153 = vmatprep.mubr.f32.mxu0 %v6143_v43  ;;  %5199 = vmatprep.mubr.f32.mxu1 %v7220_v33  ;;  %v7228_v43 = vand.u32 4294901760, %v6211_v45 }
  0x91   : > { %5154 = vmatmul.mubr.f32.gmra.mxu0 %v6161_v17  ;;  %5200 = vmatmul.mubr.f32.gmra.mxu1 %v7221_v59  ;;  %v7229_v17 = vld [vmem:[#allocation5_spill] sm:$0xff] }
  0x92   : > { %5156 = vmatprep.mubr.f32.mxu0 %v6175_v25  ;;  %5202 = vmatprep.mubr.f32.mxu1 %v7222_v1  ;;  %v7232_v25 = vld [vmem:[#allocation8_spill] sm:$0xff] }
  0x95   : > { %5157 = vmatmul.mubr.f32.gmra.mxu0 %v6193_v24  ;;  %5203 = vmatmul.mubr.f32.gmra.mxu1 %v7223_v29  ;;  %v7233_v24 = vld [vmem:[#allocation9_spill] sm:$0xff] }
  0x96   : > { %5159 = vmatprep.mubr.f32.mxu0 %v6200_v44  ;;  %5205 = vmatprep.mubr.f32.mxu1 %v7224_v0  ;;  %v7236_v44 = vld [vmem:[#allocation12_spill] sm:$0xff] }
  0x99   : > { %5160 = vmatmul.mubr.f32.gmra.mxu0 %v6211_v45  ;;  %5206 = vmatmul.mubr.f32.gmra.mxu1 %v7225_v13  ;;  %v7234_v45 = vld [vmem:[#allocation10_spill] sm:$0xff] }
  0x9a   : > { %5162 = vmatprep.mubr.f32.mxu0 %v6221_v61  ;;  %5208 = vmatprep.mubr.f32.mxu1 %v7226_v15  ;;  %v7235_v61 = vld [vmem:[#allocation11_spill] sm:$0xff] }
  0x9d   : > { %5163 = vmatmul.mubr.f32.gmra.mxu0 %v6229_v6  ;;  %5209 = vmatmul.mubr.f32.gmra.mxu1 %v7227_v3  ;;  %v7239_v6 = vld [vmem:[#allocation15_spill] sm:$0xff] }
  0x9e   : > { %5211 = vmatprep.mubr.f32.mxu1 %v626_v46  ;;  %5221 = vmatprep.mubr.f32.mxu0 %v5801_v9  ;;  %v7237_v46 = vld [vmem:[#allocation13_spill] sm:$0xff] }
  0xa1   : > { %5212 = vmatmul.mubr.f32.gmra.mxu1 %v7228_v43  ;;  %5222 = vmatmul.mubr.f32.vlgmr.msra.gmra.mxu0 %v7229_v17 }
  0xa2   : > { %5214 = vmatprep.mubr.f32.mxu1 %v646_v30  ;;  %5224 = vmatprep.mubr.f32.mxu0 %v7230_v53  ;;  %v7241_v30 = vld [vmem:[#allocation17_spill] sm:$0xff] }
  0xa5   : > { %5215 = vmatmul.mubr.f32.gmra.mxu1 %v656_v47  ;;  %5225 = vmatmul.mubr.f32.gmra.mxu0 %v7231_v12  ;;  %v7243_v47 = vld [vmem:[#allocation19_spill] sm:$0xff] }
  0xa6   : > { %5227 = vmatprep.mubr.f32.mxu0 %v7232_v25  ;;  %5273 = vmatprep.mubr.f32.mxu1 %v5801_v9  ;;  %v7238_v9 = vld [vmem:[#allocation14_spill] sm:$0xff] }
  0xa9   : > { %5228 = vmatmul.mubr.f32.gmra.mxu0 %v7233_v24  ;;  %5274 = vmatmul.mubr.f32.vlgmr.msra.gmra.mxu1 %v7229_v17 }
  0xaa   : > { %5230 = vmatprep.mubr.f32.mxu0 %v7234_v45  ;;  %5276 = vmatprep.mubr.f32.mxu1 %v7230_v53 }
  0xad   : > { %5231 = vmatmul.mubr.f32.gmra.mxu0 %v7235_v61  ;;  %5277 = vmatmul.mubr.f32.gmra.mxu1 %v7231_v12 }
  0xae   : > { %5233 = vmatprep.mubr.f32.mxu0 %v7236_v44  ;;  %5279 = vmatprep.mubr.f32.mxu1 %v7232_v25 }
  0xb1   : > { %5234 = vmatmul.mubr.f32.gmra.mxu0 %v7237_v46  ;;  %5280 = vmatmul.mubr.f32.gmra.mxu1 %v7233_v24 }
  0xb2   : > { %5236 = vmatprep.mubr.f32.mxu0 %v7238_v9  ;;  %5282 = vmatprep.mubr.f32.mxu1 %v7234_v45 }
  0xb5   : > { %5237 = vmatmul.mubr.f32.gmra.mxu0 %v7239_v6  ;;  %5283 = vmatmul.mubr.f32.gmra.mxu1 %v7235_v61 }
  0xb6   : > { %5239 = vmatprep.mubr.f32.mxu0 %v7240_v54  ;;  %5285 = vmatprep.mubr.f32.mxu1 %v7236_v44 }
  0xb9   : > { %5240 = vmatmul.mubr.f32.gmra.mxu0 %v7241_v30  ;;  %5286 = vmatmul.mubr.f32.gmra.mxu1 %v7237_v46 }
  0xba   : > { %5242 = vmatprep.mubr.f32.mxu0 %v7242_v38  ;;  %5288 = vmatprep.mubr.f32.mxu1 %v7238_v9 }
  0xbd   : > { %5243 = vmatmul.mubr.f32.gmra.mxu0 %v6008_v39  ;;  %5289 = vmatmul.mubr.f32.gmra.mxu1 %v7239_v6 }
  0xbe   : > { %5245 = vmatprep.mubr.f32.mxu0 %v7243_v47  ;;  %5291 = vmatprep.mubr.f32.mxu1 %v7240_v54 }
  0xc1   : > { %5246 = vmatmul.mubr.f32.gmra.mxu0 %v7244_v41  ;;  %5292 = vmatmul.mubr.f32.gmra.mxu1 %v7241_v30 }
  0xc2   : > { %5248 = vmatprep.mubr.f32.mxu0 %v6038_v62  ;;  %5294 = vmatprep.mubr.f32.mxu1 %v7242_v38 }
  0xc5   : > { %5249 = vmatmul.mubr.f32.gmra.mxu0 %v6059_v42  ;;  %5295 = vmatmul.mubr.f32.gmra.mxu1 %v6008_v39 }
  0xc6   : > { %5251 = vmatprep.mubr.f32.mxu0 %v6065_v48  ;;  %5297 = vmatprep.mubr.f32.mxu1 %v7243_v47 }
  0xc9   : > { %5252 = vmatmul.mubr.f32.gmra.mxu0 %v6078_v58  ;;  %5298 = vmatmul.mubr.f32.gmra.mxu1 %v7244_v41 }
  0xca   : > { %5254 = vmatprep.mubr.f32.mxu0 %v6093_v49  ;;  %5300 = vmatprep.mubr.f32.mxu1 %v6038_v62 }
  0xcd   : > { %5255 = vmatmul.mubr.f32.gmra.mxu0 %v6106_v18  ;;  %5301 = vmatmul.mubr.f32.gmra.mxu1 %v6059_v42 }
  0xce   : > { %5257 = vmatprep.mubr.f32.mxu0 %v6116_v63  ;;  %5303 = vmatprep.mubr.f32.mxu1 %v6065_v48 }
  0xd1   : > { %5258 = vmatmul.mubr.f32.gmra.mxu0 %v6132_v16  ;;  %5304 = vmatmul.mubr.f32.gmra.mxu1 %v6078_v58 }
  0xd2   : > { %5260 = vmatprep.mubr.f32.mxu0 %v6149_v22  ;;  %5306 = vmatprep.mubr.f32.mxu1 %v6093_v49 }
  0xd5   : > { %5261 = vmatmul.mubr.f32.gmra.mxu0 %v6171_v28  ;;  %5307 = vmatmul.mubr.f32.gmra.mxu1 %v6106_v18 }
  0xd6   : > { %5263 = vmatprep.mubr.f32.mxu0 %v6177_v11  ;;  %5309 = vmatprep.mubr.f32.mxu1 %v6116_v63 }
  0xd9   : > { %5264 = vmatmul.mubr.f32.gmra.mxu0 %v6195_v10  ;;  %5310 = vmatmul.mubr.f32.gmra.mxu1 %v6132_v16 }
  0xda   : > { %5266 = vmatprep.mubr.f32.mxu0 %v6202_v31  ;;  %5312 = vmatprep.mubr.f32.mxu1 %v6149_v22 }
  0xdd   : > { %5267 = vmatmul.mubr.f32.gmra.mxu0 %v6213_v52  ;;  %5313 = vmatmul.mubr.f32.gmra.mxu1 %v6171_v28 }
  0xde   : > { %5315 = vmatprep.mubr.f32.mxu1 %v6177_v11 }
  0xe1   : > { %v5015_v39 = vpop.f32.mrf.mxu0  ;;  %5316 = vmatmul.mubr.f32.gmra.mxu1 %v6195_v10 }
  0xe2   : > { %5318 = vmatprep.mubr.f32.mxu1 %v6202_v31 }
  0xe3   : > { %v6422_v63 = vpop.f32.mrf.mxu0 }
  0xe5   : > { %v5018_v62 = vpop.f32.mrf.mxu0  ;;  %5319 = vmatmul.mubr.f32.gmra.mxu1 %v6213_v52 }
  0xe7   : > { %v6425_v42 = vpop.f32.mrf.mxu0 }
  0xe9   : > { %v5021_v48 = vpop.f32.mrf.mxu0  ;;  %v5067_v22 = vpop.f32.mrf.mxu1 }
  0xea   : > { %v6427_v58 = vadd.f32 %v5067_v22, %v5015_v39 }
  0xeb   : > { %v6429_v49 = vpop.f32.mrf.mxu0  ;;  %v6431_v18 = vpop.f32.mrf.mxu1 }
  0xed   : > { %v5024_v11 = vpop.f32.mrf.mxu0  ;;  %v5070_v16 = vpop.f32.mrf.mxu1 }
  0xee   : > { %v6433_v10 = vadd.f32 %v5070_v16, %v5018_v62 }
  0xef   : > { %v6435_v28 = vpop.f32.mrf.mxu0  ;;  %v6437_v31 = vpop.f32.mrf.mxu1 }
  0xf1   : > { %v5027_v14 = vpop.f32.mrf.mxu0  ;;  %v5073_v52 = vpop.f32.mrf.mxu1 }
  0xf2   : > { %v6439_v57 = vadd.f32 %v5073_v52, %v5021_v48 }
  0xf3   : > { %v430_v8 = vpop.f32.mrf.mxu0  ;;  %v6441_v26 = vpop.f32.mrf.mxu1 }
  0xf5   : > { %v5030_v35 = vpop.f32.mrf.mxu0  ;;  %v5076_v5 = vpop.f32.mrf.mxu1 }
  0xf6   : > { %v6443_v55 = vadd.f32 %v5076_v5, %v5024_v11 }
  0xf7   : > { %v450_v19 = vpop.f32.mrf.mxu0  ;;  %v6445_v20 = vpop.f32.mrf.mxu1 }
  0xf9   : > { %v5033_v37 = vpop.f32.mrf.mxu0  ;;  %v5079_v21 = vpop.f32.mrf.mxu1 }
  0xfa   : > { %v6447_v23 = vadd.f32 %v5079_v21, %v5027_v14 }
  0xfb   : > { %v470_v32 = vpop.f32.mrf.mxu0  ;;  %v789_v34 = vpop.f32.mrf.mxu1 }
  0xfc   : > { %v6449_v36 = vadd.f32 %v789_v34, %v430_v8 }
  0xfd   : > { %v5036_v51 = vpop.f32.mrf.mxu0  ;;  %v5082_v56 = vpop.f32.mrf.mxu1 }
  0xfe   : > { %v6451_v2 = vadd.f32 %v5082_v56, %v5030_v35 }
  0xff   : > { %v490_v7 = vpop.f32.mrf.mxu0  ;;  %v801_v27 = vpop.f32.mrf.mxu1 }
 0x100   : > { %v6453_v40 = vadd.f32 %v801_v27, %v450_v19 }
 0x101   : > { %v5039_v50 = vpop.f32.mrf.mxu0  ;;  %v5085_v60 = vpop.f32.mrf.mxu1 }
 0x102   : > { %v6455_v4 = vadd.f32 %v5085_v60, %v5033_v37 }
 0x103   : > { %v510_v33 = vpop.f32.mrf.mxu0  ;;  %v813_v59 = vpop.f32.mrf.mxu1 }
 0x104   : > { %v6457_v1 = vadd.f32 %v813_v59, %v470_v32 }
 0x105   : > { %v5042_v29 = vpop.f32.mrf.mxu0  ;;  %v5088_v0 = vpop.f32.mrf.mxu1 }
 0x106   : > { %v6459_v13 = vadd.f32 %v5088_v0, %v5036_v51 }
 0x107   : > { %v530_v15 = vpop.f32.mrf.mxu0  ;;  %v825_v3 = vpop.f32.mrf.mxu1 }
 0x108   : > { %v6461_v43 = vadd.f32 %v825_v3, %v490_v7 }
 0x109   : > { %v5045_v17 = vpop.f32.mrf.mxu0  ;;  %v5091_v53 = vpop.f32.mrf.mxu1 }
 0x10a   : > { %v6463_v12 = vadd.f32 %v5091_v53, %v5039_v50 }
 0x10b   : > { %v550_v25 = vpop.f32.mrf.mxu0  ;;  %v837_v24 = vpop.f32.mrf.mxu1 }
 0x10c   : > { %v6465_v45 = vadd.f32 %v837_v24, %v510_v33 }
 0x10d   : > { %v5048_v61 = vpop.f32.mrf.mxu0  ;;  %v5094_v44 = vpop.f32.mrf.mxu1 }
 0x10e   : > { %v6467_v46 = vadd.f32 %v5094_v44, %v5042_v29 }
 0x10f   : > { %v570_v9 = vpop.f32.mrf.mxu0  ;;  %v849_v6 = vpop.f32.mrf.mxu1 }
 0x110   : > { %v6469_v54 = vadd.f32 %v849_v6, %v530_v15 }
 0x111   : > { %v5051_v30 = vpop.f32.mrf.mxu0  ;;  %v5097_v38 = vpop.f32.mrf.mxu1 }
 0x112   : > { %v6471_v47 = vadd.f32 %v5097_v38, %v5045_v17 }
 0x113   : > { %v590_v41 = vpop.f32.mrf.mxu0  ;;  %v861_v39 = vpop.f32.mrf.mxu1 }
 0x114   : > { %v6473_v62 = vadd.f32 %v861_v39, %v550_v25  ;;  %v754_v39 = vadd.f32 %v6437_v31, %v6425_v42  ;;  %v778_v31 = vadd.f32 %v6445_v20, %v6435_v28 }
 0x115   : > { %v5054_v48 = vpop.f32.mrf.mxu0  ;;  %v5100_v22 = vpop.f32.mrf.mxu1 }
 0x116   : > { %v6475_v11 = vadd.f32 %v5100_v22, %v5048_v61 }
 0x117   : > { %v610_v16 = vpop.f32.mrf.mxu0  ;;  %v873_v14 = vpop.f32.mrf.mxu1 }
 0x118   : > { %v6477_v52 = vadd.f32 %v873_v14, %v570_v9 }
 0x119   : > { %v5057_v8 = vpop.f32.mrf.mxu0  ;;  %v5103_v35 = vpop.f32.mrf.mxu1 }
 0x11a   : > { %v6479_v5 = vadd.f32 %v5103_v35, %v5051_v30 }
 0x11b   : > { %v630_v19 = vpop.f32.mrf.mxu0  ;;  %v885_v37 = vpop.f32.mrf.mxu1 }
 0x11c   : > { %v6481_v21 = vadd.f32 %v885_v37, %v590_v41 }
 0x11d   : > { %v5060_v32 = vpop.f32.mrf.mxu0  ;;  %v5106_v34 = vpop.f32.mrf.mxu1 }
 0x11e   : > { %v6483_v51 = vadd.f32 %v5106_v34, %v5054_v48 }
 0x11f   : > { %v650_v56 = vpop.f32.mrf.mxu0  ;;  %v897_v7 = vpop.f32.mrf.mxu1 }
 0x120   : > { %v6485_v27 = vadd.f32 %v897_v7, %v610_v16 }
 0x121   : > { %v5109_v50 = vpop.f32.mrf.mxu1  ;;  %v5119_v60 = vpop.f32.mrf.mxu0 }
 0x122   : > { %v6487_v33 = vadd.f32 %v5109_v50, %v5057_v8  ;;  %v1011_v59 = vadd.f32 %v5119_v60, %v6427_v58 }
 0x123   : > { %v909_v29 = vpop.f32.mrf.mxu1  ;;  %v6490_v0 = vpop.f32.mrf.mxu0 }
 0x124   : > { %v6492_v15 = vadd.f32 %v909_v29, %v630_v19 }
 0x125   : > { %v5112_v3 = vpop.f32.mrf.mxu1  ;;  %v5122_v17 = vpop.f32.mrf.mxu0 }
 0x126   : > { %v6494_v53 = vadd.f32 %v5112_v3, %v5060_v32  ;;  %v1025_v25 = vadd.f32 %v5122_v17, %v6433_v10 }
 0x127   : > { %v921_v24 = vpop.f32.mrf.mxu1  ;;  %v1017_v61 = vpop.f32.mrf.mxu0 }
 0x128   : > { %v6497_v44 = vadd.f32 %v921_v24, %v650_v56  ;;  %v1018_v10 = vadd.f32 %v1017_v61, %v754_v39 }
 0x129   : > { %v5125_v9 = vpop.f32.mrf.mxu0  ;;  %v5171_v6 = vpop.f32.mrf.mxu1 }
 0x12a   : > { %v1039_v30 = vadd.f32 %v5125_v9, %v6439_v57  ;;  %v6500_v58 = vadd.f32 %v5171_v6, %v1011_v59 }
 0x12b   : > { %v6502_v38 = vpop.f32.mrf.mxu0  ;;  %v6504_v41 = vpop.f32.mrf.mxu1 }
 0x12d   : > { %v5128_v48 = vpop.f32.mrf.mxu0  ;;  %v5174_v22 = vpop.f32.mrf.mxu1 }
 0x12e   : > { %v1053_v16 = vadd.f32 %v5128_v48, %v6443_v55  ;;  %v6509_v14 = vadd.f32 %v5174_v22, %v1025_v25 }
 0x12f   : > { %v1045_v8 = vpop.f32.mrf.mxu0  ;;  %v1311_v35 = vpop.f32.mrf.mxu1 }
 0x130   : > { %v6511_v19 = vadd.f32 %v1311_v35, %v1018_v10  ;;  %v1046_v50 = vadd.f32 %v1045_v8, %v778_v31 }
 0x131   : > { %v5131_v57 = vpop.f32.mrf.mxu0  ;;  %v5177_v37 = vpop.f32.mrf.mxu1 }
 0x132   : > { %v1067_v32 = vadd.f32 %v5131_v57, %v6447_v23  ;;  %v6514_v34 = vadd.f32 %v5177_v37, %v1039_v30 }
 0x133   : > { %v6516_v56 = vpop.f32.mrf.mxu0  ;;  %v6518_v42 = vpop.f32.mrf.mxu1 }
 0x135   : > { %v5134_v55 = vpop.f32.mrf.mxu0  ;;  %v5180_v7 = vpop.f32.mrf.mxu1 }
 0x136   : > { %v1081_v60 = vadd.f32 %v5134_v55, %v6451_v2  ;;  %v6523_v59 = vadd.f32 %v5180_v7, %v1053_v16 }
 0x137   : > { %v1073_v29 = vpop.f32.mrf.mxu0  ;;  %v1343_v3 = vpop.f32.mrf.mxu1 }
 0x138   : > { %v1074_v23 = vadd.f32 %v1073_v29, %v6453_v40  ;;  %v6526_v17 = vadd.f32 %v1343_v3, %v1046_v50 }
 0x139   : > { %v5137_v25 = vpop.f32.mrf.mxu0  ;;  %v5183_v24 = vpop.f32.mrf.mxu1 }
 0x13a   : > { %v1095_v61 = vadd.f32 %v5137_v25, %v6455_v4  ;;  %v6529_v9 = vadd.f32 %v5183_v24, %v1067_v32 }
 0x13b   : > { %v6531_v28 = vpop.f32.mrf.mxu0  ;;  %v6533_v20 = vpop.f32.mrf.mxu1 }
 0x13d   : > { %v5140_v6 = vpop.f32.mrf.mxu0  ;;  %v5186_v2 = vpop.f32.mrf.mxu1 }
 0x13e   : > { %v1109_v30 = vadd.f32 %v5140_v6, %v6459_v13  ;;  %v6536_v39 = vadd.f32 %v5186_v2, %v1081_v60 }
 0x13f   : > { %v1101_v48 = vpop.f32.mrf.mxu0  ;;  %v1375_v40 = vpop.f32.mrf.mxu1 }
 0x140   : > { %v1102_v22 = vadd.f32 %v1101_v48, %v6461_v43  ;;  %v6539_v10 = vadd.f32 %v1375_v40, %v1074_v23 }
 0x141   : > { %v5143_v16 = vpop.f32.mrf.mxu0  ;;  %v5189_v4 = vpop.f32.mrf.mxu1 }
 0x142   : > { %v1123_v8 = vadd.f32 %v5143_v16, %v6463_v12  ;;  %v6542_v35 = vadd.f32 %v5189_v4, %v1095_v61 }
 0x143   : > { %v1115_v57 = vpop.f32.mrf.mxu0  ;;  %v6544_v37 = vpop.f32.mrf.mxu1 }
 0x144   : > { %v1116_v32 = vadd.f32 %v1115_v57, %v6465_v45 }
 0x145   : > { %v6547_v13 = vpop.f32.mrf.mxu0  ;;  %v5192_v31 = vpop.f32.mrf.mxu1 }
 0x146   : > { %v6549_v55 = vadd.f32 %v5192_v31, %v1109_v30 }
 0x147   : > { %v6551_v7 = vpop.f32.mrf.mxu0  ;;  %v1407_v43 = vpop.f32.mrf.mxu1 }
 0x148   : > { %v6553_v50 = vadd.f32 %v1407_v43, %v1102_v22 }
 0x149   : > { %v5149_v60 = vpop.f32.mrf.mxu0  ;;  %v5195_v29 = vpop.f32.mrf.mxu1 }
 0x14a   : > { %v1151_v12 = vadd.f32 %v5149_v60, %v6471_v47  ;;  %v6556_v3 = vadd.f32 %v5195_v29, %v1123_v8 }
 0x14b   : > { %v1143_v23 = vpop.f32.mrf.mxu0  ;;  %v1423_v25 = vpop.f32.mrf.mxu1 }
 0x14c   : > { %v1144_v45 = vadd.f32 %v1143_v23, %v6473_v62  ;;  %v6559_v24 = vadd.f32 %v1423_v25, %v1116_v32 }
 0x14d   : > { %v5152_v61 = vpop.f32.mrf.mxu0  ;;  %v6561_v6 = vpop.f32.mrf.mxu1 }
 0x14e   : > { %v1165_v2 = vadd.f32 %v5152_v61, %v6475_v11 }
 0x14f   : > { %v1157_v30 = vpop.f32.mrf.mxu0  ;;  %v6564_v48 = vpop.f32.mrf.mxu1 }
 0x150   : > { %v1158_v40 = vadd.f32 %v1157_v30, %v6477_v52 }
 0x151   : > { %v5155_v22 = vpop.f32.mrf.mxu0  ;;  %v5201_v47 = vpop.f32.mrf.mxu1 }
 0x152   : > { %v1179_v16 = vadd.f32 %v5155_v22, %v6479_v5  ;;  %v6568_v4 = vadd.f32 %v5201_v47, %v1151_v12 }
 0x153   : > { %v1171_v8 = vpop.f32.mrf.mxu0  ;;  %v1455_v62 = vpop.f32.mrf.mxu1 }
 0x154   : > { %v1172_v57 = vadd.f32 %v1171_v8, %v6481_v21  ;;  %v6571_v32 = vadd.f32 %v1455_v62, %v1144_v45 }
 0x155   : > { %v5158_v31 = vpop.f32.mrf.mxu0  ;;  %v5204_v43 = vpop.f32.mrf.mxu1 }
 0x156   : > { %v1193_v11 = vadd.f32 %v5158_v31, %v6483_v51  ;;  %v6574_v60 = vadd.f32 %v5204_v43, %v1165_v2 }
 0x157   : > { %v1185_v29 = vpop.f32.mrf.mxu0  ;;  %v1471_v52 = vpop.f32.mrf.mxu1 }
 0x158   : > { %v1186_v23 = vadd.f32 %v1185_v29, %v6485_v27  ;;  %v6577_v25 = vadd.f32 %v1471_v52, %v1158_v40 }
 0x159   : > { %v5161_v5 = vpop.f32.mrf.mxu0  ;;  %v5207_v12 = vpop.f32.mrf.mxu1 }
 0x15a   : > { %v1207_v61 = vadd.f32 %v5161_v5, %v6487_v33  ;;  %v6580_v30 = vadd.f32 %v5207_v12, %v1179_v16 }
 0x15b   : > { %v1199_v21 = vpop.f32.mrf.mxu0  ;;  %v1487_v45 = vpop.f32.mrf.mxu1 }
 0x15c   : > { %v1200_v22 = vadd.f32 %v1199_v21, %v6492_v15  ;;  %v6583_v47 = vadd.f32 %v1487_v45, %v1172_v57  ;;  %v742_v57 = vadd.f32 %v6431_v18, %v6422_v63  ;;  %v766_v63 = vadd.f32 %v6441_v26, %v6429_v49 }
 0x15d   : > { %v5164_v51 = vpop.f32.mrf.mxu0  ;;  %v5210_v2 = vpop.f32.mrf.mxu1 }
 0x15e   : > { %v1221_v8 = vadd.f32 %v5164_v51, %v6494_v53  ;;  %v6586_v62 = vadd.f32 %v5210_v2, %v1193_v11  ;;  %v1004_v12 = vadd.f32 %v6490_v0, %v742_v57  ;;  %v1032_v0 = vadd.f32 %v6502_v38, %v766_v63 }
 0x15f   : > { %v1213_v27 = vpop.f32.mrf.mxu0  ;;  %v1503_v40 = vpop.f32.mrf.mxu1 }
 0x160   : > { %v1214_v31 = vadd.f32 %v1213_v27, %v6497_v44  ;;  %v6589_v43 = vadd.f32 %v1503_v40, %v1186_v23  ;;  %v1296_v45 = vadd.f32 %v6504_v41, %v1004_v12 }
 0x161   : > { %v5213_v33 = vpop.f32.mrf.mxu1  ;;  %v5223_v16 = vpop.f32.mrf.mxu0 }
 0x162   : > { %v6591_v29 = vadd.f32 %v5213_v33, %v1207_v61 }
 0x163   : > { %v1519_v52 = vpop.f32.mrf.mxu1  ;;  %v1620_v15 = vpop.f32.mrf.mxu0 }
 0x164   : > { %v6595_v5 = vadd.f32 %v1519_v52, %v1200_v22  ;;  %v1621_v27 = vadd.f32 %v1620_v15, %v1296_v45 }
 0x165   : > { %v5216_v53 = vpop.f32.mrf.mxu1  ;;  %v5226_v11 = vpop.f32.mrf.mxu0 }
 0x166   : > { %7245 = vst [vmem:[#allocation5_spill] sm:$0xff] %v6595_v5  ;;  %v6598_v21 = vadd.f32 %v5216_v53, %v1221_v8  ;;  %v1627_v8 = vadd.f32 %v5223_v16, %v6500_v58  ;;  %v1060_v58 = vadd.f32 %v6516_v56, %v6449_v36  ;;  %v1639_v16 = vadd.f32 %v5226_v11, %v6509_v14 }
 0x167   : > { %v1535_v44 = vpop.f32.mrf.mxu1  ;;  %v1632_v23 = vpop.f32.mrf.mxu0 }
 0x168   : > { %v6601_v51 = vadd.f32 %v1535_v44, %v1214_v31  ;;  %v1328_v31 = vadd.f32 %v6518_v42, %v1032_v0  ;;  %v1633_v44 = vadd.f32 %v1632_v23, %v6511_v19  ;;  %v1360_v19 = vadd.f32 %v6533_v20, %v1060_v58 }
 0x169   : > { %v5229_v61 = vpop.f32.mrf.mxu0  ;;  %v5275_v2 = vpop.f32.mrf.mxu1 }
 0x16a   : > { %v1886_v53 = vadd.f32 %v5275_v2, %v1627_v8  ;;  %v1651_v42 = vadd.f32 %v5229_v61, %v6514_v34 }
 0x16b   : > { %v1644_v40 = vpop.f32.mrf.mxu0  ;;  %v1879_v33 = vpop.f32.mrf.mxu1 }
 0x16c   : > { %v1880_v18 = vadd.f32 %v1879_v33, %v1621_v27  ;;  %v1645_v45 = vadd.f32 %v1644_v40, %v1328_v31  ;;  %v1088_v31 = vadd.f32 %v6531_v28, %v6457_v1 }
 0x16d   : > { %v5232_v22 = vpop.f32.mrf.mxu0  ;;  %v5278_v52 = vpop.f32.mrf.mxu1 }
 0x16e   : > { %2069 = vxpose.xlu0.b32.start [1/4] (short) (narrow) %v1880_v18, 16  ;;  %v1898_v23 = vadd.f32 %v5278_v52, %v1639_v16  ;;  %v1663_v20 = vadd.f32 %v5232_v22, %v6523_v59 }
 0x16f   : > { %v1656_v57 = vpop.f32.mrf.mxu0  ;;  %v1891_v41 = vpop.f32.mrf.mxu1 }
 0x170   : > { %v1892_v27 = vadd.f32 %v1891_v41, %v1633_v44  ;;  %v1657_v8 = vadd.f32 %v1656_v57, %v6526_v17  ;;  %v1392_v57 = vadd.f32 %v6544_v37, %v1088_v31  ;;  %v1137_v37 = vadd.f32 %v6547_v13, %v6467_v46 }
 0x171   : > { %v5235_v12 = vpop.f32.mrf.mxu0  ;;  %v5281_v15 = vpop.f32.mrf.mxu1 }
 0x172   : > { %2070 = vxpose.xlu0.b32.cont [2/4] (short) (narrow) %v1886_v53, 16  ;;  %v1910_v40 = vadd.f32 %v5281_v15, %v1651_v42  ;;  %v1675_v52 = vadd.f32 %v5235_v12, %v6529_v9 }
 0x173   : > { %v1668_v49 = vpop.f32.mrf.mxu0  ;;  %v1903_v26 = vpop.f32.mrf.mxu1 }
 0x174   : > { %v1904_v33 = vadd.f32 %v1903_v26, %v1645_v45  ;;  %v1669_v41 = vadd.f32 %v1668_v49, %v1360_v19 }
 0x175   : > { %v5238_v5 = vpop.f32.mrf.mxu0  ;;  %v5284_v38 = vpop.f32.mrf.mxu1 }
 0x176   : > { %2636 = vxpose.xlu1.b32.start [1/4] (short) (narrow) %v1904_v33, 16  ;;  %2071 = vxpose.xlu0.b32.cont [3/4] (short) (narrow) %v1892_v27, 16  ;;  %v1922_v15 = vadd.f32 %v5284_v38, %v1663_v20  ;;  %v1687_v12 = vadd.f32 %v5238_v5, %v6536_v39 }
 0x177   : > { %v1680_v2 = vpop.f32.mrf.mxu0  ;;  %v1915_v63 = vpop.f32.mrf.mxu1 }
 0x178   : > { %v1916_v14 = vadd.f32 %v1915_v63, %v1657_v8  ;;  %v1681_v26 = vadd.f32 %v1680_v2, %v6539_v10  ;;  %v1130_v2 = vadd.f32 %v6551_v7, %v6469_v54  ;;  %v1448_v63 = vadd.f32 %v6561_v6, %v1137_v37 }
 0x179   : > { %v5241_v18 = vpop.f32.mrf.mxu0  ;;  %v5287_v0 = vpop.f32.mrf.mxu1 }
 0x17a   : > { %2637 = vxpose.xlu1.b32.cont [2/4] (short) (narrow) %v1910_v40, 16  ;;  %2072 = vxpose.xlu0.b32.end [4/4] (short) (narrow) %v1898_v23, 16  ;;  %v1934_v44 = vadd.f32 %v5287_v0, %v1675_v52  ;;  %v1699_v33 = vadd.f32 %v5241_v18, %v6542_v35  ;;  %v1440_v23 = vadd.f32 %v6564_v48, %v1130_v2 }
 0x17b   : > { %v1692_v36 = vpop.f32.mrf.mxu0  ;;  %v1927_v56 = vpop.f32.mrf.mxu1 }
 0x17c   : > { %v1928_v11 = vadd.f32 %v1927_v56, %v1669_v41  ;;  %v1693_v27 = vadd.f32 %v1692_v36, %v1392_v57 }
 0x17d   : > { %v5244_v34 = vpop.f32.mrf.mxu0  ;;  %v5290_v61 = vpop.f32.mrf.mxu1 }
 0x17e   : > { %2638 = vxpose.xlu1.b32.cont [3/4] (short) (narrow) %v1916_v14, 16  ;;  %3202 = vxpose.xlu0.b32.start [1/4] (short) (narrow) %v1928_v11, 16  ;;  %v1946_v10 = vadd.f32 %v5290_v61, %v1687_v12  ;;  %v1711_v7 = vadd.f32 %v5244_v34, %v6549_v55 }
 0x17f   : > { %v1704_v53 = vpop.f32.mrf.mxu0  ;;  %v1939_v17 = vpop.f32.mrf.mxu1 }
 0x180   : > { %v1940_v59 = vadd.f32 %v1939_v17, %v1681_v26  ;;  %v1705_v39 = vadd.f32 %v1704_v53, %v6553_v50 }
 0x181   : > { %v5247_v45 = vpop.f32.mrf.mxu0  ;;  %v5293_v49 = vpop.f32.mrf.mxu1 }
 0x182   : > { %2639 = vxpose.xlu1.b32.end [4/4] (short) (narrow) %v1922_v15, 16  ;;  %3203 = vxpose.xlu0.b32.cont [2/4] (short) (narrow) %v1934_v44, 16  ;;  %v1723_v16 = vadd.f32 %v5247_v45, %v6556_v3  ;;  %v1958_v42 = vadd.f32 %v5293_v49, %v1699_v33 }
 0x183   : > { %v1716_v1 = vpop.f32.mrf.mxu0  ;;  %v1951_v28 = vpop.f32.mrf.mxu1 }
 0x184   : > { %v1952_v22 = vadd.f32 %v1951_v28, %v1693_v27  ;;  %v1717_v35 = vadd.f32 %v1716_v1, %v6559_v24 }
 0x185   : > { %v5296_v9 = vpop.f32.mrf.mxu1  ;;  %v5250_v38 = vpop.f32.mrf.mxu0 }
 0x186   : > { %3768 = vxpose.xlu1.b32.start [1/4] (short) (narrow) %v1952_v22, 16  ;;  %3204 = vxpose.xlu0.b32.cont [3/4] (short) (narrow) %v1940_v59, 16  ;;  %v1735_v40 = vadd.f32 %v5250_v38, %v1448_v63  ;;  %v1970_v41 = vadd.f32 %v5296_v9, %v1711_v7 }
 0x187   : > { %v1963_v58 = vpop.f32.mrf.mxu1  ;;  %v1728_v46 = vpop.f32.mrf.mxu0 }
 0x188   : > { %v1964_v3 = vadd.f32 %v1963_v58, %v1705_v39  ;;  %v1729_v6 = vadd.f32 %v1728_v46, %v1440_v23 }
 0x189   : > { %v5299_v19 = vpop.f32.mrf.mxu1  ;;  %v5253_v27 = vpop.f32.mrf.mxu0 }
 0x18a   : > { %v1982_v5 = vadd.f32 %v5299_v19, %v1723_v16  ;;  %3769 = vxpose.xlu1.b32.cont [2/4] (short) (narrow) %v1958_v42, 16  ;;  %3205 = vxpose.xlu0.b32.end [4/4] (short) (narrow) %v1946_v10, 16 }
 0x18b   : > { %v1975_v13 = vpop.f32.mrf.mxu1  ;;  %v1740_v28 = vpop.f32.mrf.mxu0 }
 0x18c   : > { %v1976_v18 = vadd.f32 %v1975_v13, %v1717_v35  ;;  %v6632_v0 = vand.u32 4294901760, %v1982_v5  ;;  %v1741_v23 = vadd.f32 %v1740_v28, %v6571_v32 }
 0x18d   : > { %v5302_v54 = vpop.f32.mrf.mxu1  ;;  %v5256_v22 = vpop.f32.mrf.mxu0 }
 0x18e   : > { %v1994_v8 = vadd.f32 %v5302_v54, %v1735_v40  ;;  %3770 = vxpose.xlu1.b32.cont [3/4] (short) (narrow) %v1964_v3, 16  ;;  %v6635_v50 = vand.u32 4294901760, %v1976_v18  ;;  %v6640_v48 = vsub.f32 %v1982_v5, %v6632_v0  ;;  %v1759_v58 = vadd.f32 %v5256_v22, %v6574_v60 }
 0x18f   : > { %v1987_v24 = vpop.f32.mrf.mxu1  ;;  %v1752_v37 = vpop.f32.mrf.mxu0  ;;  %v1747_v5 = vadd.f32 %v5253_v27, %v6568_v4 }
 0x190   : > { %v6637_v36 = vand.u32 4294901760, %v1994_v8  ;;  %v1988_v56 = vadd.f32 %v1987_v24, %v1729_v6  ;;  %v6649_v55 = vsub.f32 %v1976_v18, %v6635_v50  ;;  %v6661_v31 = vand.u32 4294901760, %v6640_v48 }
 0x191   : > { %v5305_v1 = vpop.f32.mrf.mxu1  ;;  %v1753_v2 = vadd.f32 %v1752_v37, %v6577_v25 }
 0x192   : > { %v6643_v14 = vsub.f32 %v1994_v8, %v6637_v36  ;;  %v6645_v11 = vand.u32 4294901760, %v1988_v56  ;;  %5321 = vmatprep.subr.mxu0 %v6637_v36  ;;  %3771 = vxpose.xlu1.b32.end [4/4] (short) (narrow) %v1970_v41, 16  ;;  %v6671_v53 = vand.u32 4294901760, %v6649_v55  ;;  %v2239_v15 = vsub.f32 %v6640_v48, %v6661_v31 }
 0x193   : > { %5322 = vmatpush3.msra.mxu0 %v6637_v36  ;;  %v1999_v59 = vpop.f32.mrf.mxu1  ;;  %v2006_v40 = vadd.f32 %v5305_v1, %v1747_v5 }
 0x194   : > { %v6653_v34 = vsub.f32 %v1988_v56, %v6645_v11  ;;  %5323 = vmatprep.subr.mxu0 %v6645_v11  ;;  %v6658_v61 = vand.u32 4294901760, %v6643_v14  ;;  %v2246_v45 = vsub.f32 %v6649_v55, %v6671_v53  ;;  %v2240_v49 = vand.u32 4294901760, %v2239_v15 }
 0x195   : > { %5324 = vmatpush3.msra.mxu0 %v6645_v11  ;;  %v5308_v9 = vpop.f32.mrf.mxu1  ;;  %v2000_v54 = vadd.f32 %v1999_v59, %v1741_v23  ;;  %v6705_v32 = vand.u32 4294901760, %v2006_v40 }
 0x196   : > { %5325 = vmatprep.subr.mxu0 %v6632_v0  ;;  %v2225_v20 = vsub.f32 %v6643_v14, %v6658_v61  ;;  %v6668_v52 = vand.u32 4294901760, %v6653_v34  ;;  %v2247_v26 = vand.u32 4294901760, %v2246_v45  ;;  %v2018_v63 = vadd.f32 %v5308_v9, %v1759_v58 }
 0x197   : > { %5326 = vmatpush3.msra.mxu0 %v6632_v0  ;;  %v2011_v10 = vpop.f32.mrf.mxu1  ;;  %v6712_v41 = vand.u32 4294901760, %v2000_v54 }
 0x198   : > { %5327 = vmatprep.subr.mxu0 %v6635_v50  ;;  %v2226_v17 = vand.u32 4294901760, %v2225_v20  ;;  %v2232_v57 = vsub.f32 %v6653_v34, %v6668_v52  ;;  %v2012_v46 = vadd.f32 %v2011_v10, %v1753_v2  ;;  %v6697_v3 = vand.u32 4294901760, %v2018_v63 }
 0x199   : > { %5328 = vmatpush3.msra.mxu0 %v6635_v50  ;;  %v6730_v15 = vsub.f32 %v2000_v54, %v6712_v41  ;;  %v6749_v27 = vpop.f32.mrf.mxu1 }
 0x19a   : > { %5343 = vmatprep.subr.mxu0 %v6643_v14  ;;  %5332 = vmatprep.subr.mxu1 %v2226_v17  ;;  %v2233_v44 = vand.u32 4294901760, %v2232_v57  ;;  %v6701_v4 = vand.u32 4294901760, %v2012_v46  ;;  %v6708_v6 = vsub.f32 %v2018_v63, %v6697_v3 }
 0x19b   : > { %5333 = vmatpush3.msra.mxu1 %v2226_v17  ;;  %v6721_v17 = vsub.f32 %v2006_v40, %v6705_v32  ;;  %v6761_v1 = vand.u32 4294901760, %v6730_v15  ;;  %v2023_v22 = vpop.f32.mrf.mxu1 }
 0x19c   : > { %5334 = vmatprep.subr.mxu1 %v2233_v44  ;;  %v6715_v56 = vsub.f32 %v2012_v46, %v6701_v4  ;;  %v6725_v57 = vand.u32 4294901760, %v6708_v6 }
 0x19d   : > { %5335 = vmatpush3.msra.mxu1 %v2233_v44  ;;  %v5314_v58 = vpop.f32.mrf.mxu1 }
 0x19e   : > { %5336 = vmatprep.subr.mxu1 %v2240_v49  ;;  %v6736_v45 = vand.u32 4294901760, %v6715_v56 }
 0x19f   : > { %5337 = vmatpush3.msra.mxu1 %v2240_v49  ;;  %v6738_v49 = vpop.f32.mrf.mxu0 }
 0x1a0   : > { %5338 = vmatprep.subr.mxu1 %v2247_v26 }
 0x1a1   : > { %5339 = vmatpush3.msra.mxu1 %v2247_v26  ;;  %v6747_v26 = vand.u32 4294901760, %v6721_v17  ;;  %v1764_v28 = vpop.f32.mrf.mxu0 }
 0x1a2   : > { %5354 = vmatprep.subr.mxu1 %v6637_v36 }
 0x1a3   : > { %v2805_v59 = vsub.f32 %v6721_v17, %v6747_v26 }
 0x1a5   : > { %v2806_v37 = vand.u32 4294901760, %v2805_v59 }
 0x1ea   : > { %v2085_v12 = vpop.trf.xlu0 }
 0x1eb   : > { %v2103_v33 = vsel %vm2101_vm2, %v2085_v12, 0  ;;  %v2812_v12 = vsub.f32 %v6730_v15, %v6761_v1 }
 0x1ec   : > { %v6684_v38 = vand.u32 4294901760, %v2103_v33 }
 0x1ed   : > { %v2813_v10 = vand.u32 4294901760, %v2812_v12 }
 0x1ee   : > { %v2178_v16 = vsub.f32 %v2103_v33, %v6684_v38  ;;  %v2086_v42 = vpop.trf.xlu0  ;;  %5340 = vmatprep.mubr.f32.mxu1 %v6684_v38  ;;  %v5262_v33 = vpop.f32.mrf.mxu0 }
 0x1ef   : > { %v2106_v19 = vsel %vm2101_vm2, %v2086_v42, 0 }
 0x1f0   : > { %v6691_v39 = vand.u32 4294901760, %v2106_v19  ;;  %v2179_v35 = vand.u32 4294901760, %v2178_v16  ;;  %v1776_v42 = vpop.f32.mrf.mxu0 }
 0x1f1   : > { %v1777_v2 = vadd.f32 %v1776_v42, %v6589_v43  ;;  %v1765_v43 = vadd.f32 %v1764_v28, %v6583_v47 }
 0x1f2   : > { %v2188_v13 = vsub.f32 %v2106_v19, %v6691_v39  ;;  %5341 = vmatmul.mubr.f32.vlgmr.msra.gmra.mxu1 %v6691_v39  ;;  %v2180_v60 = vsub.f32 %v2178_v16, %v2179_v35  ;;  %v2652_v8 = vpop.trf.xlu1 }
 0x1f3   : > { %5355 = vmatpush3.msra.mxu1 %v6637_v36  ;;  %5362 = vmatprep.mubr.f32.mxu1 %v2179_v35  ;;  %v2669_v20 = vsel %vm2101_vm2, %v2652_v8, 0 }
 0x1f4   : > { %v2189_v25 = vand.u32 4294901760, %v2188_v13  ;;  %5356 = vmatprep.subr.mxu1 %v6645_v11  ;;  %v2181_v18 = vand.u32 4294901760, %v2180_v60  ;;  %v6733_v44 = vand.u32 4294901760, %v2669_v20 }
 0x1f5   : > { %5357 = vmatpush3.msra.mxu1 %v6645_v11 }
 0x1f6   : > { %v2190_v7 = vsub.f32 %v2188_v13, %v2189_v25  ;;  %5358 = vmatprep.subr.mxu1 %v6632_v0  ;;  %5329 = vmatprep.mubr.f32.mxu0 %v2181_v18 }
 0x1f7   : > { %5359 = vmatpush3.msra.mxu1 %v6632_v0 }
 0x1f8   : > { %v2191_v24 = vand.u32 4294901760, %v2190_v7  ;;  %5360 = vmatprep.subr.mxu1 %v6635_v50 }
 0x1f9   : > { %5361 = vmatpush3.msra.mxu1 %v6635_v50 }
 0x1fa   : > { %5363 = vmatmul.mubr.f32.vlgmr.msra.gmra.mxu1 %v2189_v25  ;;  %5376 = vmatprep.subr.mxu1 %v6637_v36  ;;  %v3218_v23 = vpop.trf.xlu0 }
 0x1fb   : > { %5330 = vmatmul.mubr.f32.vlgmr.msra.gmra.mxu0 %v2191_v24  ;;  %5377 = vmatpush3.msra.mxu1 %v6637_v36  ;;  %v2791_v36 = vsub.f32 %v6708_v6, %v6725_v57  ;;  %v3235_v18 = vsel %vm2101_vm2, %v3218_v23, 0 }
 0x1fc   : > { %5344 = vmatpush3.msra.mxu0 %v6643_v14  ;;  %5384 = vmatprep.mubr.f32.mxu1 %v6684_v38  ;;  %v2653_v14 = vpop.trf.xlu1  ;;  %v6846_v24 = vand.u32 4294901760, %v3235_v18 }
 0x1fd   : > { %5345 = vmatprep.subr.mxu0 %v6653_v34  ;;  %5351 = vmatprep.mubr.f32.mxu0 %v2178_v16 }
 0x1fe   : > { %5378 = vmatprep.subr.mxu1 %v6645_v11  ;;  %5346 = vmatpush3.msra.mxu0 %v6653_v34  ;;  %v6755_v34 = vsub.f32 %v2669_v20, %v6733_v44 }
 0x1ff   : > { %5379 = vmatpush3.msra.mxu1 %v6645_v11  ;;  %5347 = vmatprep.subr.mxu0 %v6640_v48  ;;  %v2798_v11 = vsub.f32 %v6715_v56, %v6736_v45 }
 0x200   : > { %5380 = vmatprep.subr.mxu1 %v6632_v0  ;;  %5348 = vmatpush3.msra.mxu0 %v6640_v48  ;;  %v2672_v48 = vsel %vm2101_vm2, %v2653_v14, 0 }
 0x201   : > { %5381 = vmatpush3.msra.mxu1 %v6632_v0  ;;  %5349 = vmatprep.subr.mxu0 %v6649_v55  ;;  %v2792_v0 = vand.u32 4294901760, %v2791_v36  ;;  %v6772_v9 = vand.u32 4294901760, %v2672_v48 }
 0x202   : > { %5382 = vmatprep.subr.mxu1 %v6635_v50  ;;  %5350 = vmatpush3.msra.mxu0 %v6649_v55  ;;  %v2799_v55 = vand.u32 4294901760, %v2798_v11 }
 0x203   : > { %5383 = vmatpush3.msra.mxu1 %v6635_v50  ;;  %5352 = vmatmul.mubr.f32.vlgmr.msra.gmra.mxu0 %v2188_v13  ;;  %v2745_v50 = vand.u32 4294901760, %v6755_v34 }
 0x204   : > { %5365 = vmatprep.subr.mxu0 %v6658_v61  ;;  %5385 = vmatmul.mubr.f32.vlgmr.msra.gmra.mxu1 %v6691_v39 }
 0x205   : > { %5398 = vmatprep.subr.mxu1 %v2792_v0  ;;  %5366 = vmatpush3.msra.mxu0 %v6658_v61  ;;  %v6781_v61 = vsub.f32 %v2672_v48, %v6772_v9  ;;  %v2746_v16 = vsub.f32 %v6755_v34, %v2745_v50 }
 0x206   : > { %5373 = vmatprep.mubr.f32.mxu0 %v6684_v38  ;;  %5399 = vmatpush3.msra.mxu1 %v2792_v0  ;;  %v1783_v38 = vadd.f32 %v5262_v33, %v6586_v62  ;;  %v1771_v62 = vadd.f32 %v6738_v49, %v6580_v30  ;;  %v2024_v30 = vadd.f32 %v2023_v22, %v1765_v43  ;;  %v3219_v49 = vpop.trf.xlu0 }
 0x207   : > { %5367 = vmatprep.subr.mxu0 %v6668_v52  ;;  %5400 = vmatprep.subr.mxu1 %v2799_v55  ;;  %v2755_v19 = vand.u32 4294901760, %v6781_v61 }
 0x208   : > { %5368 = vmatpush3.msra.mxu0 %v6668_v52  ;;  %5401 = vmatpush3.msra.mxu1 %v2799_v55  ;;  %v2035_v52 = vpop.f32.mrf.mxu1  ;;  %v2042_v63 = vadd.f32 %v5314_v58, %v1783_v38  ;;  %v6823_v40 = vand.u32 4294901760, %v2024_v30 }
 0x209   : > { %5369 = vmatprep.subr.mxu0 %v6661_v31  ;;  %5402 = vmatprep.subr.mxu1 %v2806_v37  ;;  %v2036_v35 = vadd.f32 %v2035_v52, %v1777_v2  ;;  %v2756_v5 = vsub.f32 %v6781_v61, %v2755_v19 }
 0x20a   : > { %5370 = vmatpush3.msra.mxu0 %v6661_v31  ;;  %5403 = vmatpush3.msra.mxu1 %v2806_v37  ;;  %v2747_v31 = vand.u32 4294901760, %v2746_v16  ;;  %v6842_v8 = vsub.f32 %v2024_v30, %v6823_v40  ;;  %v6862_v14 = vpop.f32.mrf.mxu1 }
 0x20b   : > { %5371 = vmatprep.subr.mxu0 %v6671_v53  ;;  %5404 = vmatprep.subr.mxu1 %v2813_v10  ;;  %v6808_v46 = vand.u32 4294901760, %v2036_v35  ;;  %v2757_v60 = vand.u32 4294901760, %v2756_v5 }
 0x20c   : > { %5406 = vmatprep.mubr.f32.mxu1 %v6733_v44  ;;  %5372 = vmatpush3.msra.mxu0 %v6671_v53  ;;  %v2030_v53 = vadd.f32 %v6749_v27, %v1771_v62  ;;  %v6874_v27 = vand.u32 4294901760, %v6842_v8  ;;  %v2047_v28 = vpop.f32.mrf.mxu1 }
 0x20d   : > { %5405 = vmatpush3.msra.mxu1 %v2813_v10  ;;  %5374 = vmatmul.mubr.f32.vlgmr.msra.gmra.mxu0 %v6691_v39  ;;  %v6802_v39 = vand.u32 4294901760, %v2042_v63  ;;  %v6826_v25 = vsub.f32 %v2036_v35, %v6808_v46 }
 0x20e   : > { %5387 = vmatprep.subr.mxu0 %v6697_v3  ;;  %5407 = vmatmul.mubr.f32.vlgmr.msra.gmra.mxu1 %v6772_v9  ;;  %v6814_v47 = vand.u32 4294901760, %v2030_v53  ;;  %v5320_v55 = vpop.f32.mrf.mxu1 }
 0x20f   : > { %5420 = vmatprep.subr.mxu1 %v6697_v3  ;;  %5388 = vmatpush3.msra.mxu0 %v6697_v3  ;;  %v6817_v13 = vsub.f32 %v2042_v63, %v6802_v39  ;;  %v6849_v20 = vand.u32 4294901760, %v6826_v25 }
 0x210   : > { %5421 = vmatpush3.msra.mxu1 %v6697_v3  ;;  %5428 = vmatprep.mubr.f32.mxu1 %v2745_v50  ;;  %v6832_v54 = vsub.f32 %v2030_v53, %v6814_v47 }
 0x211   : > { %5389 = vmatprep.subr.mxu0 %v6701_v4  ;;  %5395 = vmatprep.mubr.f32.mxu0 %v2747_v31  ;;  %v6837_v7 = vand.u32 4294901760, %v6817_v13 }
 0x212   : > { %5422 = vmatprep.subr.mxu1 %v6701_v4  ;;  %5390 = vmatpush3.msra.mxu0 %v6701_v4  ;;  %v6860_v36 = vand.u32 4294901760, %v6832_v54 }
 0x213   : > { %5423 = vmatpush3.msra.mxu1 %v6701_v4  ;;  %5391 = vmatprep.subr.mxu0 %v6705_v32 }
 0x214   : > { %5424 = vmatprep.subr.mxu1 %v6705_v32  ;;  %5392 = vmatpush3.msra.mxu0 %v6705_v32  ;;  %v3371_v11 = vsub.f32 %v6832_v54, %v6860_v36 }
 0x215   : > { %5425 = vmatpush3.msra.mxu1 %v6705_v32  ;;  %5393 = vmatprep.subr.mxu0 %v6712_v41 }
 0x216   : > { %5426 = vmatprep.subr.mxu1 %v6712_v41  ;;  %5394 = vmatpush3.msra.mxu0 %v6712_v41  ;;  %v3372_v22 = vand.u32 4294901760, %v3371_v11 }
 0x217   : > { %5427 = vmatpush3.msra.mxu1 %v6712_v41  ;;  %5396 = vmatmul.mubr.f32.vlgmr.msra.gmra.mxu0 %v2757_v60 }
 0x218   : > { %5409 = vmatprep.subr.mxu0 %v6708_v6  ;;  %5429 = vmatmul.mubr.f32.vlgmr.msra.gmra.mxu1 %v2755_v19  ;;  %v3784_v19 = vpop.trf.xlu1 }
 0x219   : > { %5442 = vmatprep.subr.mxu1 %v6697_v3  ;;  %5410 = vmatpush3.msra.mxu0 %v6708_v6  ;;  %v6851_v6 = vpop.f32.mrf.mxu0  ;;  %v3801_v35 = vsel %vm2101_vm2, %v3784_v19, 0 }
 0x21a   : > { %5417 = vmatprep.mubr.f32.mxu0 %v6755_v34  ;;  %5443 = vmatpush3.msra.mxu1 %v6697_v3  ;;  %v3357_v3 = vsub.f32 %v6817_v13, %v6837_v7  ;;  %v6960_v30 = vand.u32 4294901760, %v3801_v35 }
 0x21b   : > { %5450 = vmatprep.mubr.f32.mxu1 %v6733_v44  ;;  %5411 = vmatprep.subr.mxu0 %v6715_v56  ;;  %v1788_v34 = vpop.f32.mrf.mxu0 }
 0x21c   : > { %5444 = vmatprep.subr.mxu1 %v6701_v4  ;;  %5412 = vmatpush3.msra.mxu0 %v6715_v56  ;;  %v3364_v56 = vsub.f32 %v6826_v25, %v6849_v20 }
 0x21d   : > { %5445 = vmatpush3.msra.mxu1 %v6701_v4  ;;  %5413 = vmatprep.subr.mxu0 %v6721_v17  ;;  %v6869_v4 = vsub.f32 %v3235_v18, %v6846_v24  ;;  %v5268_v59 = vpop.f32.mrf.mxu0  ;;  %v6978_v18 = vsub.f32 %v3801_v35, %v6960_v30 }
 0x21e   : > { %5446 = vmatprep.subr.mxu1 %v6705_v32  ;;  %5414 = vmatpush3.msra.mxu0 %v6721_v17  ;;  %v3238_v17 = vsel %vm2101_vm2, %v3219_v49, 0  ;;  %v3365_v48 = vand.u32 4294901760, %v3364_v56 }
 0x21f   : > { %5447 = vmatpush3.msra.mxu1 %v6705_v32  ;;  %5415 = vmatprep.subr.mxu0 %v6730_v15  ;;  %v3358_v32 = vand.u32 4294901760, %v3357_v3  ;;  %v3311_v0 = vand.u32 4294901760, %v6869_v4  ;;  %v1800_v33 = vpop.f32.mrf.mxu0 }
 0x220   : > { %5448 = vmatprep.subr.mxu1 %v6712_v41  ;;  %5416 = vmatpush3.msra.mxu0 %v6730_v15  ;;  %v6886_v15 = vand.u32 4294901760, %v3238_v17  ;;  %v1801_v37 = vadd.f32 %v1800_v33, %v6601_v51  ;;  %v7246_v51 = vld [vmem:[#allocation5_spill] sm:$0xff] }
 0x221   : > { %5449 = vmatpush3.msra.mxu1 %v6712_v41  ;;  %5418 = vmatmul.mubr.f32.vlgmr.msra.gmra.mxu0 %v6781_v61  ;;  %v3378_v41 = vsub.f32 %v6842_v8, %v6874_v27  ;;  %v3312_v50 = vsub.f32 %v6869_v4, %v3311_v0 }
 0x222   : > { %5431 = vmatprep.subr.mxu0 %v6725_v57  ;;  %5451 = vmatmul.mubr.f32.vlgmr.msra.gmra.mxu1 %v6772_v9 }
 0x223   : > { %5464 = vmatprep.subr.mxu1 %v3358_v32  ;;  %5432 = vmatpush3.msra.mxu0 %v6725_v57  ;;  %v6895_v57 = vsub.f32 %v3238_v17, %v6886_v15  ;;  %v3379_v12 = vand.u32 4294901760, %v3378_v41 }
 0x224   : > { %5439 = vmatprep.mubr.f32.mxu0 %v6733_v44  ;;  %5465 = vmatpush3.msra.mxu1 %v3358_v32  ;;  %v1807_v44 = vadd.f32 %v5268_v59, %v6598_v21  ;;  %v1795_v21 = vadd.f32 %v6851_v6, %v6591_v29 }
 0x225   : > { %5433 = vmatprep.subr.mxu0 %v6736_v45  ;;  %5466 = vmatprep.subr.mxu1 %v3365_v48  ;;  %v3321_v61 = vand.u32 4294901760, %v6895_v57 }
 0x226   : > { %5434 = vmatpush3.msra.mxu0 %v6736_v45  ;;  %5467 = vmatpush3.msra.mxu1 %v3365_v48  ;;  %v2059_v45 = vpop.f32.mrf.mxu1  ;;  %v2066_v58 = vadd.f32 %v5320_v55, %v1807_v44 }
 0x227   : > { %5435 = vmatprep.subr.mxu0 %v6747_v26  ;;  %5468 = vmatprep.subr.mxu1 %v3372_v22  ;;  %v2060_v10 = vadd.f32 %v2059_v45, %v1801_v37  ;;  %v3322_v42 = vsub.f32 %v6895_v57, %v3321_v61 }
 0x228   : > { %5436 = vmatpush3.msra.mxu0 %v6747_v26  ;;  %5469 = vmatpush3.msra.mxu1 %v3372_v22  ;;  %v3313_v26 = vand.u32 4294901760, %v3312_v50  ;;  %v6916_v16 = vand.u32 4294901760, %v2066_v58 }
 0x229   : > { %5437 = vmatprep.subr.mxu0 %v6761_v1  ;;  %5470 = vmatprep.subr.mxu1 %v3379_v12  ;;  %v6922_v38 = vand.u32 4294901760, %v2060_v10  ;;  %v3323_v63 = vand.u32 4294901760, %v3322_v42 }
 0x22a   : > { %5472 = vmatprep.mubr.f32.mxu1 %v6846_v24  ;;  %5438 = vmatpush3.msra.mxu0 %v6761_v1  ;;  %v1789_v1 = vadd.f32 %v1788_v34, %v7246_v51  ;;  %v6931_v2 = vsub.f32 %v2066_v58, %v6916_v16 }
 0x22b   : > { %5471 = vmatpush3.msra.mxu1 %v3379_v12  ;;  %5440 = vmatmul.mubr.f32.vlgmr.msra.gmra.mxu0 %v6772_v9  ;;  %v2054_v9 = vadd.f32 %v6862_v14, %v1795_v21  ;;  %v6940_v62 = vsub.f32 %v2060_v10, %v6922_v38 }
 0x22c   : > { %5453 = vmatprep.subr.mxu0 %v6802_v39  ;;  %5473 = vmatmul.mubr.f32.vlgmr.msra.gmra.mxu1 %v6886_v15  ;;  %v2048_v29 = vadd.f32 %v2047_v28, %v1789_v1  ;;  %v6951_v53 = vand.u32 4294901760, %v6931_v2 }
 0x22d   : > { %5486 = vmatprep.subr.mxu1 %v6802_v39  ;;  %5454 = vmatpush3.msra.mxu0 %v6802_v39  ;;  %v6928_v52 = vand.u32 4294901760, %v2054_v9  ;;  %v6963_v60 = vand.u32 4294901760, %v6940_v62 }
 0x22e   : > { %5487 = vmatpush3.msra.mxu1 %v6802_v39  ;;  %5494 = vmatprep.mubr.f32.mxu1 %v3311_v0  ;;  %v6937_v31 = vand.u32 4294901760, %v2048_v29 }
 0x22f   : > { %5455 = vmatprep.subr.mxu0 %v6808_v46  ;;  %5461 = vmatprep.mubr.f32.mxu0 %v3313_v26  ;;  %v6946_v43 = vsub.f32 %v2054_v9, %v6928_v52 }
 0x230   : > { %5488 = vmatprep.subr.mxu1 %v6808_v46  ;;  %5456 = vmatpush3.msra.mxu0 %v6808_v46  ;;  %v6956_v5 = vsub.f32 %v2048_v29, %v6937_v31 }
 0x231   : > { %5489 = vmatpush3.msra.mxu1 %v6808_v46  ;;  %5457 = vmatprep.subr.mxu0 %v6814_v47  ;;  %v6972_v23 = vand.u32 4294901760, %v6946_v43 }
 0x232   : > { %5490 = vmatprep.subr.mxu1 %v6814_v47  ;;  %5458 = vmatpush3.msra.mxu0 %v6814_v47 }
 0x233   : > { %5491 = vmatpush3.msra.mxu1 %v6814_v47  ;;  %5459 = vmatprep.subr.mxu0 %v6823_v40 }
 0x234   : > { %5492 = vmatprep.subr.mxu1 %v6823_v40  ;;  %5460 = vmatpush3.msra.mxu0 %v6823_v40 }
 0x235   : > { %5493 = vmatpush3.msra.mxu1 %v6823_v40  ;;  %5462 = vmatmul.mubr.f32.vlgmr.msra.gmra.mxu0 %v3323_v63 }
 0x236   : > { %5475 = vmatprep.subr.mxu0 %v6817_v13  ;;  %5495 = vmatmul.mubr.f32.vlgmr.msra.gmra.mxu1 %v3321_v61 }
 0x237   : > { %5508 = vmatprep.subr.mxu1 %v6802_v39  ;;  %5476 = vmatpush3.msra.mxu0 %v6817_v13  ;;  %v3785_v13 = vpop.trf.xlu1 }
 0x238   : > { %5483 = vmatprep.mubr.f32.mxu0 %v6869_v4  ;;  %5509 = vmatpush3.msra.mxu1 %v6802_v39  ;;  %v3923_v39 = vsub.f32 %v6931_v2, %v6951_v53  ;;  %v3804_v6 = vsel %vm2101_vm2, %v3785_v13, 0 }
 0x239   : > { %5516 = vmatprep.mubr.f32.mxu1 %v6846_v24  ;;  %5477 = vmatprep.subr.mxu0 %v6826_v25  ;;  %v6996_v3 = vand.u32 4294901760, %v3804_v6 }
 0x23a   : > { %5510 = vmatprep.subr.mxu1 %v6808_v46  ;;  %5478 = vmatpush3.msra.mxu0 %v6826_v25  ;;  %v6984_v25 = vand.u32 4294901760, %v6956_v5 }
 0x23b   : > { %5511 = vmatpush3.msra.mxu1 %v6808_v46  ;;  %5479 = vmatprep.subr.mxu0 %v6832_v54  ;;  %v3930_v46 = vsub.f32 %v6940_v62, %v6963_v60 }
 0x23c   : > { %5512 = vmatprep.subr.mxu1 %v6814_v47  ;;  %5480 = vmatpush3.msra.mxu0 %v6832_v54  ;;  %v3937_v54 = vsub.f32 %v6946_v43, %v6972_v23  ;;  %v3944_v49 = vsub.f32 %v6956_v5, %v6984_v25 }
 0x23d   : > { %5513 = vmatpush3.msra.mxu1 %v6814_v47  ;;  %5481 = vmatprep.subr.mxu0 %v6842_v8  ;;  %v3924_v47 = vand.u32 4294901760, %v3923_v39 }
 0x23e   : > { %5514 = vmatprep.subr.mxu1 %v6823_v40  ;;  %5482 = vmatpush3.msra.mxu0 %v6842_v8  ;;  %v3931_v8 = vand.u32 4294901760, %v3930_v46  ;;  %v3938_v14 = vand.u32 4294901760, %v3937_v54  ;;  %v3945_v4 = vand.u32 4294901760, %v3944_v49  ;;  %v4339_v46 = vlaneseq }
 0x23f   : > { %5515 = vmatpush3.msra.mxu1 %v6823_v40  ;;  %5484 = vmatmul.mubr.f32.vlgmr.msra.gmra.mxu0 %v6895_v57  ;;  %v3877_v40 = vand.u32 4294901760, %v6978_v18  ;;  %v5704_v54 = vmov 1983009808  }
 0x240   : > { %5497 = vmatprep.subr.mxu0 %v6837_v7  ;;  %5517 = vmatmul.mubr.f32.vlgmr.msra.gmra.mxu1 %v6886_v15 }
 0x241   : > { %5530 = vmatprep.subr.mxu1 %v3924_v47  ;;  %5498 = vmatpush3.msra.mxu0 %v6837_v7  ;;  %v3886_v7 = vsub.f32 %v3804_v6, %v6996_v3  ;;  %v3878_v56 = vsub.f32 %v6978_v18, %v3877_v40 }
 0x242   : > { %5505 = vmatprep.mubr.f32.mxu0 %v6846_v24  ;;  %5531 = vmatpush3.msra.mxu1 %v3924_v47 }
 0x243   : > { %5499 = vmatprep.subr.mxu0 %v6849_v20  ;;  %5532 = vmatprep.subr.mxu1 %v3931_v8  ;;  %v3887_v24 = vand.u32 4294901760, %v3886_v7 }
 0x244   : > { %5500 = vmatpush3.msra.mxu0 %v6849_v20  ;;  %5533 = vmatpush3.msra.mxu1 %v3931_v8  ;;  %v3879_v20 = vand.u32 4294901760, %v3878_v56 }
 0x245   : > { %5501 = vmatprep.subr.mxu0 %v6860_v36  ;;  %5534 = vmatprep.subr.mxu1 %v3938_v14 }
 0x246   : > { %5502 = vmatpush3.msra.mxu0 %v6860_v36  ;;  %5535 = vmatpush3.msra.mxu1 %v3938_v14  ;;  %v3888_v36 = vsub.f32 %v3886_v7, %v3887_v24 }
 0x247   : > { %5503 = vmatprep.subr.mxu0 %v6874_v27  ;;  %5536 = vmatprep.subr.mxu1 %v3945_v4 }
 0x248   : > { %5538 = vmatprep.mubr.f32.mxu1 %v6960_v30  ;;  %5504 = vmatpush3.msra.mxu0 %v6874_v27  ;;  %v3889_v27 = vand.u32 4294901760, %v3888_v36 }
 0x249   : > { %5537 = vmatpush3.msra.mxu1 %v3945_v4  ;;  %5506 = vmatmul.mubr.f32.vlgmr.msra.gmra.mxu0 %v6886_v15 }
 0x24a   : > { %5519 = vmatprep.subr.mxu0 %v6916_v16  ;;  %5539 = vmatmul.mubr.f32.vlgmr.msra.gmra.mxu1 %v6996_v3 }
 0x24b   : > { %5552 = vmatprep.subr.mxu1 %v6916_v16  ;;  %5520 = vmatpush3.msra.mxu0 %v6916_v16 }
 0x24c   : > { %5553 = vmatpush3.msra.mxu1 %v6916_v16  ;;  %5560 = vmatprep.mubr.f32.mxu1 %v3877_v40 }
 0x24d   : > { %5521 = vmatprep.subr.mxu0 %v6922_v38  ;;  %5527 = vmatprep.mubr.f32.mxu0 %v3879_v20 }
 0x24e   : > { %5554 = vmatprep.subr.mxu1 %v6922_v38  ;;  %5522 = vmatpush3.msra.mxu0 %v6922_v38 }
 0x24f   : > { %5555 = vmatpush3.msra.mxu1 %v6922_v38  ;;  %5523 = vmatprep.subr.mxu0 %v6928_v52 }
 0x250   : > { %5556 = vmatprep.subr.mxu1 %v6928_v52  ;;  %5524 = vmatpush3.msra.mxu0 %v6928_v52 }
 0x251   : > { %5557 = vmatpush3.msra.mxu1 %v6928_v52  ;;  %5525 = vmatprep.subr.mxu0 %v6937_v31 }
 0x252   : > { %5558 = vmatprep.subr.mxu1 %v6937_v31  ;;  %5526 = vmatpush3.msra.mxu0 %v6937_v31 }
 0x253   : > { %5559 = vmatpush3.msra.mxu1 %v6937_v31  ;;  %5528 = vmatmul.mubr.f32.vlgmr.msra.gmra.mxu0 %v3889_v27 }
 0x254   : > { %5541 = vmatprep.subr.mxu0 %v6931_v2  ;;  %5561 = vmatmul.mubr.f32.vlgmr.msra.gmra.mxu1 %v3887_v24 }
 0x255   : > { %5574 = vmatprep.subr.mxu1 %v6916_v16  ;;  %5542 = vmatpush3.msra.mxu0 %v6931_v2 }
 0x256   : > { %5549 = vmatprep.mubr.f32.mxu0 %v6978_v18  ;;  %5575 = vmatpush3.msra.mxu1 %v6916_v16 }
 0x257   : > { %5582 = vmatprep.mubr.f32.mxu1 %v6960_v30  ;;  %5543 = vmatprep.subr.mxu0 %v6940_v62 }
 0x258   : > { %5576 = vmatprep.subr.mxu1 %v6922_v38  ;;  %5544 = vmatpush3.msra.mxu0 %v6940_v62 }
 0x259   : > { %5577 = vmatpush3.msra.mxu1 %v6922_v38  ;;  %5545 = vmatprep.subr.mxu0 %v6946_v43 }
 0x25a   : > { %5578 = vmatprep.subr.mxu1 %v6928_v52  ;;  %5546 = vmatpush3.msra.mxu0 %v6946_v43 }
 0x25b   : > { %5579 = vmatpush3.msra.mxu1 %v6928_v52  ;;  %5547 = vmatprep.subr.mxu0 %v6956_v5 }
 0x25c   : > { %5580 = vmatprep.subr.mxu1 %v6937_v31  ;;  %5548 = vmatpush3.msra.mxu0 %v6956_v5 }
 0x25d   : > { %5581 = vmatpush3.msra.mxu1 %v6937_v31  ;;  %5550 = vmatmul.mubr.f32.vlgmr.msra.gmra.mxu0 %v3886_v7 }
 0x25e   : > { %5563 = vmatprep.subr.mxu0 %v6951_v53  ;;  %5583 = vmatmul.mubr.f32.vlgmr.msra.gmra.mxu1 %v6996_v3 }
 0x25f   : > { %5564 = vmatpush3.msra.mxu0 %v6951_v53  ;;  %5571 = vmatprep.mubr.f32.mxu0 %v6960_v30 }
 0x260   : > { %5565 = vmatprep.subr.mxu0 %v6963_v60 }
 0x261   : > { %5566 = vmatpush3.msra.mxu0 %v6963_v60 }
 0x262   : > { %5567 = vmatprep.subr.mxu0 %v6972_v23 }
 0x263   : > { %5568 = vmatpush3.msra.mxu0 %v6972_v23 }
 0x264   : > { %5569 = vmatprep.subr.mxu0 %v6984_v25 }
 0x265   : > { %5570 = vmatpush3.msra.mxu0 %v6984_v25 }
 0x266   : > { %5572 = vmatmul.mubr.f32.vlgmr.msra.gmra.mxu0 %v6996_v3  ;;  %v4337_v3 = vunpack.c.l.s4 %v5704_v54 }
 0x2b2   : > { %v5342_v17 = vpop.f32.mrf.mxu1 }
 0x2b4   : > { %v2284_v28 = vpop.f32.mrf.mxu1 }
 0x2ba   : > { %v5364_v48 = vpop.f32.mrf.mxu1 }
 0x2bb   : > { %v5331_v34 = vpop.f32.mrf.mxu0 }
 0x2bc   : > { %v7058_v0 = vpop.f32.mrf.mxu1  ;;  %v2291_v43 = vadd.f32 %v5342_v17, %v5331_v34 }
 0x2bd   : > { %v2183_v32 = vpop.f32.mrf.mxu0 }
 0x2be   : > { %v2285_v49 = vadd.f32 %v2284_v28, %v2183_v32 }
 0x2c3   : > { %v5353_v11 = vpop.f32.mrf.mxu0 }
 0x2c4   : > { %v7060_v59 = vpop.f32.mrf.mxu1  ;;  %v2378_v60 = vadd.f32 %v5353_v11, %v2291_v43  ;;  %v4340_v11 = vshrl.u32 %v4339_v46, 7 }
 0x2c5   : > { %v2370_v15 = vpop.f32.mrf.mxu0 }
 0x2c6   : > { %v7064_v57 = vpop.f32.mrf.mxu1  ;;  %v2463_v40 = vadd.f32 %v5364_v48, %v2378_v60  ;;  %v2371_v27 = vadd.f32 %v2370_v15, %v2285_v49 }
 0x2cd   : > { %v5375_v41 = vpop.f32.mrf.mxu0 }
 0x2ce   : > { %v5408_v12 = vpop.f32.mrf.mxu1  ;;  %v2552_v34 = vadd.f32 %v5375_v41, %v2463_v40  ;;  %v5708_v40 = vmov 0.0  }
 0x2cf   : > { %v7062_v22 = vpop.f32.mrf.mxu0 }
 0x2d0   : > { %v2850_v44 = vpop.f32.mrf.mxu1 }
 0x2d7   : > { %v5397_v55 = vpop.f32.mrf.mxu0 }
 0x2d8   : > { %v5430_v45 = vpop.f32.mrf.mxu1  ;;  %v2857_v39 = vadd.f32 %v5408_v12, %v5397_v55 }
 0x2d9   : > { %v2749_v50 = vpop.f32.mrf.mxu0 }
 0x2da   : > { %v3020_v61 = vpop.f32.mrf.mxu1  ;;  %v2851_v23 = vadd.f32 %v2850_v44, %v2749_v50 }
 0x2e1   : > { %v5419_v33 = vpop.f32.mrf.mxu0 }
 0x2e2   : > { %v7066_v26 = vpop.f32.mrf.mxu1  ;;  %v2944_v6 = vadd.f32 %v5419_v33, %v2857_v39  ;;  %v4338_v33 = vunpack.c.0.s8 %v4337_v3 }
 0x2e3   : > { %v2936_v37 = vpop.f32.mrf.mxu0 }
 0x2e4   : > { %v7068_v51 = vpop.f32.mrf.mxu1  ;;  %v2937_v14 = vadd.f32 %v2936_v37, %v2851_v23  ;;  %v3029_v17 = vadd.f32 %v5430_v45, %v2944_v6  ;;  %v2633_v37 = vadd.f32 %v7060_v59, %v2552_v34 }
 0x2e6   : > { %v3021_v12 = vadd.f32 %v3020_v61, %v2937_v14 }
 0x2eb   : > { %v5441_v58 = vpop.f32.mrf.mxu0 }
 0x2ec   : > { %v5474_v1 = vpop.f32.mrf.mxu1  ;;  %v3118_v32 = vadd.f32 %v5441_v58, %v3029_v17 }
 0x2ed   : > { %v3111_v21 = vpop.f32.mrf.mxu0 }
 0x2ee   : > { %v3416_v42 = vpop.f32.mrf.mxu1  ;;  %v3199_v58 = vadd.f32 %v7066_v26, %v3118_v32 }
 0x2f5   : > { %v5463_v10 = vpop.f32.mrf.mxu0 }
 0x2f6   : > { %v5496_v29 = vpop.f32.mrf.mxu1  ;;  %v3423_v62 = vadd.f32 %v5474_v1, %v5463_v10  ;;  %v5705_v10 = vmov 1934713408  }
 0x2f7   : > { %v3315_v9 = vpop.f32.mrf.mxu0  ;;  %v4369_v1 = vunpack.c.l.s4 %v5705_v10 }
 0x2f8   : > { %v3586_v2 = vpop.f32.mrf.mxu1  ;;  %v3417_v47 = vadd.f32 %v3416_v42, %v3315_v9  ;;  %v2455_v9 = vadd.f32 %v7058_v0, %v2371_v27 }
 0x2fa   : > { %v2546_v61 = vadd.f32 %v7062_v22, %v2455_v9 }
 0x2ff   : > { %v5485_v16 = vpop.f32.mrf.mxu0 }
 0x300   : > { %v5518_v63 = vpop.f32.mrf.mxu1  ;;  %v3510_v53 = vadd.f32 %v5485_v16, %v3423_v62  ;;  %v3112_v16 = vadd.f32 %v3111_v21, %v3021_v12 }
 0x301   : > { %v3502_v38 = vpop.f32.mrf.mxu0 }
 0x302   : > { %v3758_v35 = vpop.f32.mrf.mxu1  ;;  %v3595_v18 = vadd.f32 %v5496_v29, %v3510_v53  ;;  %v3503_v24 = vadd.f32 %v3502_v38, %v3417_v47  ;;  %v4341_v38 = vsub.s32 %v4338_v33, %v4340_v11  ;;  %v3193_v59 = vadd.f32 %v7068_v51, %v3112_v16 }
 0x304   : > { %v3587_v28 = vadd.f32 %v3586_v2, %v3503_v24 }
 0x309   : > { %v5507_v52 = vpop.f32.mrf.mxu0 }
 0x30a   : > { %v5540_v5 = vpop.f32.mrf.mxu1  ;;  %v3684_v7 = vadd.f32 %v5507_v52, %v3595_v18 }
 0x30b   : > { %v3677_v19 = vpop.f32.mrf.mxu0 }
 0x30c   : > { %v3982_v25 = vpop.f32.mrf.mxu1  ;;  %v3765_v50 = vadd.f32 %v5518_v63, %v3684_v7  ;;  %v3678_v41 = vadd.f32 %v3677_v19, %v3587_v28 }
 0x30e   : > { %v4402_v52 = vcombine.low %v2633_v37, %v3765_v50  ;;  %v4403_v2 = vcombine.high %v2633_v37, %v3765_v50  ;;  %v3759_v21 = vadd.f32 %v3758_v35, %v3678_v41 }
 0x310   : > { %v4410_v60 = vrot.slane %v4402_v52, %v4341_v38  ;;  %v4417_v39 = vrot.slane %v4403_v2, %v4341_v38 }
 0x313   : > { %v5529_v31 = vpop.f32.mrf.mxu0 }
 0x314   : > { %v3989_v8 = vadd.f32 %v5540_v5, %v5529_v31  ;;  %v5562_v4 = vpop.f32.mrf.mxu1  ;;  %v4370_v31 = vunpack.c.0.s8 %v4369_v1 }
 0x315   : > { %v3881_v30 = vpop.f32.mrf.mxu0 }
 0x316   : > { %v3983_v20 = vadd.f32 %v3982_v25, %v3881_v30  ;;  %v4152_v44 = vpop.f32.mrf.mxu1  ;;  %v2627_v30 = vadd.f32 %v7064_v57, %v2546_v61  ;;  %v4373_v22 = vsub.s32 %v4370_v31, %v4340_v11 }
 0x318   : > { %v4334_v46 = vcombine.low %v2627_v30, %v3759_v21 }
 0x31a   : > { %v4342_v49 = vrot.slane %v4334_v46, %v4341_v38 }
 0x31d   : > { %v5551_v13 = vpop.f32.mrf.mxu0 }
 0x31e   : > { %v4076_v36 = vadd.f32 %v5551_v13, %v3989_v8  ;;  %v5584_v42 = vpop.f32.mrf.mxu1  ;;  %v4335_v8 = vcombine.high %v2627_v30, %v3759_v21 }
 0x31f   : > { %v4068_v56 = vpop.f32.mrf.mxu0 }
 0x320   : > { %v4069_v55 = vadd.f32 %v4068_v56, %v3983_v20  ;;  %v4161_v48 = vadd.f32 %v5562_v4, %v4076_v36  ;;  %v4324_v0 = vpop.f32.mrf.mxu1  ;;  %v4349_v24 = vrot.slane %v4335_v8, %v4341_v38 }
 0x322   : > { %v4153_v29 = vadd.f32 %v4152_v44, %v4069_v55 }
 0x326   : > { %v5573_v15 = vpop.f32.mrf.mxu0 }
 0x327   : > { %v4250_v45 = vadd.f32 %v5573_v15, %v4161_v48 }
 0x328   : > { %v4243_v63 = vpop.f32.mrf.mxu0 }
 0x329   : > { %v4331_v62 = vadd.f32 %v5584_v42, %v4250_v45  ;;  %v4244_v43 = vadd.f32 %v4243_v63, %v4153_v29 }
 0x32b   : > { %v4418_v53 = vcombine.low %v3199_v58, %v4331_v62  ;;  %v4419_v5 = vcombine.high %v3199_v58, %v4331_v62  ;;  %v4325_v19 = vadd.f32 %v4324_v0, %v4244_v43 }
 0x32d   : > { %v4426_v13 = vrot.slane %v4418_v53, %v4341_v38  ;;  %v4433_v23 = vrot.slane %v4419_v5, %v4341_v38  ;;  %v4350_v18 = vcombine.low %v3193_v59, %v4325_v19  ;;  %v4351_v6 = vcombine.high %v3193_v59, %v4325_v19 }
 0x32f   : > { %v4450_v26 = vcombine.low %v4417_v39, %v4433_v23  ;;  %v4435_v25 = vcombine.high %v4410_v60, %v4426_v13  ;;  %v4434_v47 = vcombine.low %v4410_v60, %v4426_v13  ;;  %v4358_v54 = vrot.slane %v4350_v18, %v4341_v38 }
 0x330   : > { %v4365_v57 = vrot.slane %v4351_v6, %v4341_v38  ;;  %v4451_v12 = vcombine.high %v4417_v39, %v4433_v23 }
 0x331   : > { %v4458_v51 = vrot.slane %v4450_v26, %v4373_v22  ;;  %v4449_v3 = vrot.slane %v4435_v25, %v4373_v22  ;;  %v4442_v35 = vrot.slane %v4434_v47, %v4373_v22  ;;  %v4367_v4 = vcombine.high %v4342_v49, %v4358_v54 }
 0x332   : > { %v4366_v56 = vcombine.low %v4342_v49, %v4358_v54  ;;  %v4382_v27 = vcombine.low %v4349_v24, %v4365_v57  ;;  %v4383_v55 = vcombine.high %v4349_v24, %v4365_v57  ;;  %v4465_v33 = vrot.slane %v4451_v12, %v4373_v22 }
 0x333   : > { %4511 = vrot.lane.b32.xlu0 %v4458_v51, %s5706_s5  ;;  %4503 = vrot.lane.b32.xlu1 %v4449_v3, %s5707_s6  ;;  %v4467_v14 = vcombine.high %v4449_v3, %v5708_v40  ;;  %v4466_v7 = vcombine.high %v4442_v35, %v5708_v40  ;;  %v4468_v20 = vcombine.high %v4458_v51, %v5708_v40 }
 0x334   : > { %v4381_v36 = vrot.slane %v4367_v4, %v4373_v22  ;;  %v4374_v34 = vrot.slane %v4366_v56, %v4373_v22  ;;  %v4390_v17 = vrot.slane %v4382_v27, %v4373_v22  ;;  %v4397_v50 = vrot.slane %v4383_v55, %v4373_v22 }
 0x335   : > { %v4469_v10 = vcombine.high %v4465_v33, %v5708_v40 }
 0x336   : > { %v4398_v11 = vcombine.high %v4374_v34, %v5708_v40  ;;  %v4399_v44 = vcombine.high %v4381_v36, %v5708_v40  ;;  %v4400_v1 = vcombine.high %v4390_v17, %v5708_v40  ;;  %v4401_v32 = vcombine.high %v4397_v50, %v5708_v40 }
 0x337   : > { %4507 = vrot.lane.b32.xlu0 %v4467_v14, %s5709_s7  ;;  %4499 = vrot.lane.b32.xlu1 %v4466_v7, %s5710_s8 }
 0x33b   : > { %4515 = vrot.lane.b32.xlu0 %v4468_v20, %s5711_s14  ;;  %4475 = vrot.lane.b32.xlu1 %v4381_v36, %s5707_s6 }
 0x33f   : > { %4483 = vrot.lane.b32.xlu1 %v4390_v17, %s5706_s5  ;;  %4471 = vrot.lane.b32.xlu0 %v4398_v11, %s5710_s8 }
 0x343   : > { %4491 = vrot.lane.b32.xlu1 %v4397_v50, %s5712_s16  ;;  %4519 = vrot.lane.b32.xlu0 %v4465_v33, %s5712_s16 }
 0x347   : > { %4479 = vrot.lane.b32.xlu1 %v4399_v44, %s5709_s7  ;;  %4523 = vrot.lane.b32.xlu0 %v4469_v10, %s5713_s17 }
 0x34b   : > { %4487 = vrot.lane.b32.xlu1 %v4400_v1, %s5711_s14 }
 0x34f   : > { %4495 = vrot.lane.b32.xlu1 %v4401_v32, %s5713_s17 }
 0x3a5   : > { %v4512_v28 = vpop.permute.xlu0 %4511  ;;  %v4504_v48 = vpop.permute.xlu1 %4503 }
 0x3a9   : > { %v4508_v37 = vpop.permute.xlu0 %4507  ;;  %v4500_v9 = vpop.permute.xlu1 %4499 }
 0x3aa   : > { %v4539_v16 = vsel %vm4526_vm3, %v4442_v35, %v4500_v9 }
 0x3ab   : > { %v4540_v41 = vsel %vm2101_vm2, %v4539_v16, %v4504_v48 }
 0x3ac   : > { %v4541_v61 = vsel %vm4529_vm4, %v4540_v41, %v4508_v37 }
 0x3ad   : > { %v4516_v42 = vpop.permute.xlu0 %4515  ;;  %v4476_v15 = vpop.permute.xlu1 %4475  ;;  %v4542_v38 = vsel %vm4531_vm5, %v4541_v61, %v4512_v28 }
 0x3ae   : > { %v4543_v58 = vsel %vm4533_vm6, %v4542_v38, %v4516_v42 }
 0x3b1   : > { %v4484_v45 = vpop.permute.xlu1 %4483  ;;  %v4472_v29 = vpop.permute.xlu0 %4471 }
 0x3b2   : > { %v4527_v31 = vsel %vm4526_vm3, %v4374_v34, %v4472_v29 }
 0x3b3   : > { %v4528_v43 = vsel %vm2101_vm2, %v4527_v31, %v4476_v15 }
 0x3b5   : > { %v4492_v52 = vpop.permute.xlu1 %4491  ;;  %v4520_v63 = vpop.permute.xlu0 %4519 }
 0x3b6   : > { %v4544_v2 = vsel %vm4535_vm7, %v4543_v58, %v4520_v63 }
 0x3b9   : > { %v4480_v62 = vpop.permute.xlu1 %4479  ;;  %v4524_v59 = vpop.permute.xlu0 %4523 }
 0x3ba   : > { %v4530_v0 = vsel %vm4529_vm4, %v4528_v43, %v4480_v62  ;;  %v4545_v21 = vsel %vm4537_vm8, %v4544_v2, %v4524_v59 }
 0x3bb   : > { %v4653_v53 = vmul.f32 -1.442695, %v4545_v21  ;;  %v4532_v19 = vsel %vm4531_vm5, %v4530_v0, %v4484_v45 }
 0x3bd   : > { %5634 = vpow2.f32 %v4653_v53  ;;  %v4488_v5 = vpop.permute.xlu1 %4487 }
 0x3be   : > { %v4534_v30 = vsel %vm4533_vm6, %v4532_v19, %v4488_v5 }
 0x3bf   : > { %v4536_v22 = vsel %vm4535_vm7, %v4534_v30, %v4492_v52 }
 0x3c1   : > { %v4496_v60 = vpop.permute.xlu1 %4495 }
 0x3c2   : > { %v4538_v39 = vsel %vm4537_vm8, %v4536_v22, %v4496_v60 }
 0x3c3   : > { %v4652_v13 = vmul.f32 -1.442695, %v4538_v39 }
 0x3c5   : > { %5636 = vpow2.f32 %v4652_v13 }
 0x3ca   : > { %v5635_v23 = vpop.eup %5634 }
 0x3cb   : > { %v4553_v18 = vadd.f32 1.0, %v5635_v23 }
 0x3cd   : > { %5638 = vrcp.f32 %v4553_v18 }
 0x3d2   : > { %v5637_v46 = vpop.eup %5636 }
 0x3d3   : > { %v4552_v26 = vadd.f32 1.0, %v5637_v46 }
 0x3d5   : > { %5640 = vrcp.f32 %v4552_v26 }
 0x3da   : > { %v5639_v25 = vpop.eup %5638 }
 0x3db   : > { %v4559_v6 = vmul.f32 1.4, %v5639_v25 }
 0x3dd   : > { %v4561_v47 = vadd.f32 -0.2, %v4559_v6 }
 0x3df   : > { %v4563_v35 = vmax.f32 %v4561_v47, 0.0 }
 0x3e1   : > { %v4565_v57 = vmin.f32 %v4563_v35, 1.0 }
 0x3e2   : > { %v5641_v54 = vpop.eup %5640 }
 0x3e3   : > { %v4558_v51 = vmul.f32 1.4, %v5641_v54 }
 0x3e5   : > { %v4560_v3 = vadd.f32 -0.2, %v4558_v51 }
 0x3e7   : > { %v4562_v8 = vmax.f32 %v4560_v3, 0.0 }
 0x3e9   : > { %v4564_v49 = vmin.f32 %v4562_v8, 1.0 }
 0x3eb   : > { %v4568_v40 = vcombine.low %v4564_v49, %v4565_v57 }
 0x3ed   : > { %4570 = vst [vmem:[%s136_s24] sm:$0xff] %v4568_v40 }
 0x3ee   : > { %5655 = shalt.err (!%p5652_p3)
}
 0x3ef   : > { %s5656_s5 = scalar_lea.hbm %s4584_s28, 128  ;;  %s5660_s8 = scalar_lea.hbm %s7120_s2, 256 }
 0x3f0   : > { %p5657_p4 = scmp.ne.s32.totalorder %s4584_s28, %s5656_s5  ;;  %p5661_p9 = scmp.lt.s32.totalorder %s4584_s28, %s7120_s2 }
 0x3f1   : > { %p5662_p10 = scmp.lt.s32.totalorder %s5660_s8, %s5656_s5 }
 0x3f2   : > { %p5658_p7 = pnand %p5657_p4, %p5768_p5 }
 0x3f3   : > { %p5663_p11 = por %p5662_p10, %p5661_p9 }
 0x3f4   : > { %p5659_p8 = pneg %p5658_p7 }
 0x3f6   : > { %p5664_p12 = pnand %p5663_p11, %p5659_p8 }
 0x3f8   : > { %5667 = shalt.err (!%p5664_p12)
}
 0x3f9   : > { %5585 = dma.vmem_to_hbm [thread:$0]  (%p5768_p5), %s4587_s25, 128, %s4584_s28, %s4572_s29  }
 0x3fa PF: > { %p5591_p13 = scmp.ge.s32.totalorder %s5702_s12, 2  ;;  %s4598_s17 = sand.u32 1, %s5690_s9  }
 0x3fb   : > { %s4599_s21 = scalar_lea.sflag [#allocation3], %s4598_s17 }
 0x3fc   : > { %p5588_p0 = pnand %p5591_p13, %p5772_p6 }
 0x3fe   : > { %p5589_p1 = pneg %p5588_p0 }
 0x400   : > { %5685 = dma.done.wait (%p5589_p1), %s4599_s21, 128  }
 0x401   : > { %5687 = vsyncadd (%p5589_p1), %s4599_s21, 4294967168  ;;  %p12_p2 = scmp.ge.s32.totalorder %s5755_s15, 4   ;;  %s7247_s9 = smov %s5694_s10 }
 0x402   : > { %s7248_s10 = smov %s5698_s11  ;;  %s7249_s11 = smov %s5766_s18 }
 0x403   : > { %s7250_s12 = smov %s5755_s15  ;;  %14 = sbr.rel (!%p12_p2) target bundleno = 3 (0x3), region = 63 }
 0x408   :  { %4604 = vsyncpa [#allocation3], 1 }
 0x409   :  { %4606 = vsyncpa [#allocation3 + $0x1], 1 }

</bundles_post_ra>
